<compile_context>
chip_gen: v6e
topology: v6e:2x2x1
jax: 0.10.0
libtpu: 0.0.40
codegen_flags: <defaults>
</compile_context>

<pallas_src>
import functools

import jax
import jax.numpy as jnp
from jax import lax
from jax.experimental import pallas as pl
from jax.experimental.pallas import tpu as pltpu


def _round_up(v, m):
    return ((v + m - 1) // m) * m


# ---------------------------------------------------------------------------
# Kernel 1: projection pre-pass  H_aug = x @ W_aug  (one MXU pass per layer)
# ---------------------------------------------------------------------------
def _proj_kernel(x_ref, w_ref, h_ref, s_ref, *, fout_pad: int):
    haug = jnp.dot(x_ref[...], w_ref[...], preferred_element_type=jnp.float32)
    h_ref[...] = haug[:, :fout_pad].astype(h_ref.dtype)   # projected features (+den col)
    s_ref[...] = haug[:, fout_pad:]                        # col 0: s_dst, col 1: s_src


def _project(x_p, w_aug, *, fout_pad, tile):
    n_pad, fin_pad = x_p.shape
    fa = w_aug.shape[1]
    return pl.pallas_call(
        functools.partial(_proj_kernel, fout_pad=fout_pad),
        out_shape=(jax.ShapeDtypeStruct((n_pad, fout_pad), jnp.bfloat16),
                   jax.ShapeDtypeStruct((n_pad, 128), jnp.float32)),
        grid_spec=pltpu.PrefetchScalarGridSpec(
            num_scalar_prefetch=0,
            grid=(n_pad // tile,),
            in_specs=[pl.BlockSpec((tile, fin_pad), lambda i: (i, 0)),
                      pl.BlockSpec((fin_pad, fa), lambda i: (0, 0))],
            out_specs=[pl.BlockSpec((tile, fout_pad), lambda i: (i, 0)),
                       pl.BlockSpec((tile, 128), lambda i: (i, 0))],
        ),
        compiler_params=pltpu.CompilerParams(dimension_semantics=("parallel",)),
    )(x_p, w_aug)


# ---------------------------------------------------------------------------
# Kernel 2: attention + aggregation over (dst_tile, compressed src_tile)
# ---------------------------------------------------------------------------
def _gat_attn_kernel(kidx_ref, knnz_ref,                    # scalar-prefetch (SMEM)
                     sdst_ref, m_ref, ssrc_ref, h_ref, adj_ref, b_ref,
                     out_ref, acc_sc, *, apply_elu: bool, den_col: int):
    i = pl.program_id(0)
    k = pl.program_id(1)

    @pl.when(k == 0)
    def _init():
        acc_sc[...] = jnp.zeros_like(acc_sc)

    @pl.when(k < knnz_ref[i])            # skip padded / empty adjacency tiles
    def _accumulate():
        # logits e_ij = LeakyReLU(s_dst_i + s_src_j), f32
        e = sdst_ref[...] + ssrc_ref[...]                         # (TQ,1)+(1,TK)
        e = jnp.where(e > 0, e, jnp.float32(0.2) * e)
        # m_i is a static upper bound over all *valid* logits, so the clamp only
        # affects masked (zeroed) entries; exp never overflows.
        p = jnp.exp(jnp.minimum(e - m_ref[...], jnp.float32(0.0)))
        p = p.astype(jnp.bfloat16) * adj_ref[...].astype(jnp.bfloat16)  # mask-multiply
        # Pure MXU accumulate (H carries a constant-1 den column -> the softmax
        # denominator accumulates in acc[:, den_col] for free).
        acc_sc[...] += jnp.dot(p, h_ref[...], preferred_element_type=jnp.float32)

    @pl.when(k == pl.num_programs(1) - 1)
    def _finalize():
        acc = acc_sc[...]
        denom = jnp.maximum(acc[:, den_col:den_col + 1], jnp.float32(1e-20))
        out = acc * pl.reciprocal(denom, approx=True) + b_ref[...]
        # Reset the denominator column to exactly 1.0: it is the next layer's
        # constant-1 input feature (removes approx-reciprocal drift).
        col = lax.broadcasted_iota(jnp.int32, out.shape, 1)
        out = jnp.where(col == den_col, jnp.float32(1.0), out)
        if apply_elu:
            out = jnp.where(out > 0, out, jnp.exp(out) - jnp.float32(1.0))
        out_ref[...] = out.astype(out_ref.dtype)                 # lane-dense store


def gat_conv(x_p, adj_p, kidx, knnz, layer, *, apply_elu, out_dtype,
             tq, tk, max_nnz, n_valid):
    """One GATConv layer on padded inputs.

    x_p:   (Np, Fin_p) bf16 node features (with constant-1 column)
    adj_p: (Np, Np) int8 adjacency mask (with self-loops)
    kidx:  (Np//tq, max_nnz) int32 compressed nonzero-src-tile indices
    knnz:  (Np//tq,) int32 per-dst-tile nonzero-tile counts
    """
    n_pad, _ = x_p.shape
    fout_pad = layer["fout_pad"]
    den_col = layer["den_col"]

    # ---- projection pre-pass: H, s_dst, s_src in one MXU pass ----
    h, s = _project(x_p, layer["w_aug"], fout_pad=fout_pad, tile=tq)
    s_dst = s[:, 0:1]                                   # (Np, 1) f32
    s_src = s[:, 1:2].reshape(1, n_pad)                 # (1, Np) f32
    s_max = jnp.max(s[:n_valid, 1])                     # max over valid src rows
    msum = s_dst + s_max
    m_col = jnp.where(msum > 0, msum, jnp.float32(0.2) * msum)   # static row bound

    kern = functools.partial(_gat_attn_kernel, apply_elu=apply_elu, den_col=den_col)
    return pl.pallas_call(
        kern,
        out_shape=jax.ShapeDtypeStruct((n_pad, fout_pad), out_dtype),
        grid_spec=pltpu.PrefetchScalarGridSpec(
            num_scalar_prefetch=2,
            grid=(n_pad // tq, max_nnz),
            in_specs=[
                pl.BlockSpec((tq, 1), lambda i, k, kidx, knnz: (i, 0)),            # s_dst
                pl.BlockSpec((tq, 1), lambda i, k, kidx, knnz: (i, 0)),            # m bound
                pl.BlockSpec((1, tk), lambda i, k, kidx, knnz: (0, kidx[i, k])),   # s_src
                pl.BlockSpec((tk, fout_pad), lambda i, k, kidx, knnz: (kidx[i, k], 0)),  # H
                pl.BlockSpec((tq, tk), lambda i, k, kidx, knnz: (i, kidx[i, k])),  # adj int8
                pl.BlockSpec((1, fout_pad), lambda i, k, kidx, knnz: (0, 0)),      # bias
            ],
            out_specs=pl.BlockSpec((tq, fout_pad), lambda i, k, kidx, knnz: (i, 0)),
            scratch_shapes=[pltpu.VMEM((tq, fout_pad), jnp.float32)],   # accumulator
        ),
        compiler_params=pltpu.CompilerParams(
            dimension_semantics=("parallel", "arbitrary")),
    )(kidx, knnz, s_dst, m_col, s_src, h, adj_p, layer["b"])


# ---------------------------------------------------------------------------
# Parameter / graph preparation
# ---------------------------------------------------------------------------
def prep_gat_layer(w, a_src, a_dst, bias, *, fin_pad, ones_col):
    """Pad one GATConv layer's parameters into the augmented W the kernels use."""
    fin, fout = w.shape
    assert fin <= ones_col < fin_pad
    den_col = fout
    fout_pad = _round_up(fout + 1, 128)
    fa = fout_pad + 128                                   # + 128-lane score chunk
    w_aug = jnp.zeros((fin_pad, fa), jnp.float32)
    w_aug = w_aug.at[:fin, :fout].set(w)                  # projection
    w_aug = w_aug.at[ones_col, den_col].set(1.0)          # constant-1 -> denominator col
    w_aug = w_aug.at[:fin, fout_pad + 0].set((w @ a_dst)[:, 0])   # s_dst column
    w_aug = w_aug.at[:fin, fout_pad + 1].set((w @ a_src)[:, 0])   # s_src column
    b_p = jnp.zeros((1, fout_pad), jnp.float32).at[0, :fout].set(bias.reshape(-1))
    return {"w_aug": w_aug.astype(jnp.bfloat16), "b": b_p,
            "den_col": den_col, "fout_pad": int(fout_pad)}


def prep_graph(adj, num_nodes, *, tq=128, tk=128):
    """One-time per-graph preprocessing: padded int8 adjacency + tile schedule."""
    assert tq % 128 == 0 and tk % 128 == 0
    n_pad = _round_up(num_nodes, max(tq, tk))
    adj_p = jnp.zeros((n_pad, n_pad), jnp.int8)
    adj_p = adj_p.at[:num_nodes, :num_nodes].set(adj.astype(jnp.int8))
    adj_p = adj_p.at[jnp.arange(n_pad), jnp.arange(n_pad)].set(1)   # self-loops everywhere
    nqt, nkt = n_pad // tq, n_pad // tk
    tile_nz = adj_p.reshape(nqt, tq, nkt, tk).astype(jnp.int32).sum(axis=(1, 3)) > 0
    knnz = tile_nz.sum(axis=-1).astype(jnp.int32)                   # >= 1 (diag tile)
    max_nnz = int(jnp.max(knnz))                                    # static grid extent
    order = jnp.argsort(jnp.logical_not(tile_nz).astype(jnp.int32), axis=-1)
    kidx = order[:, :max_nnz].astype(jnp.int32)
    return {"adj_p": adj_p, "kidx": kidx, "knnz": knnz, "max_nnz": max_nnz,
            "n_pad": n_pad, "num_nodes": num_nodes, "tq": tq, "tk": tk}


def make_gat_forward(params, graph):
    """Build a jitted forward pass x -> logits for a fixed, preprocessed graph."""
    n, n_pad = graph["num_nodes"], graph["n_pad"]
    tq, tk, max_nnz = graph["tq"], graph["tk"], graph["max_nnz"]
    adj_p, kidx, knnz = graph["adj_p"], graph["kidx"], graph["knnz"]

    fin, hidden = params["w0"].shape
    out_ch = params["w1"].shape[1]
    fin_pad = _round_up(fin + 1, 128)
    ones_col0 = fin                                       # constant-1 input column

    layer0 = prep_gat_layer(params["w0"], params["a_src0"], params["a_dst0"],
                            params["b0"], fin_pad=fin_pad, ones_col=ones_col0)
    # Layer 0's denominator column (reset to exactly 1) is layer 1's constant-1 column.
    layer1 = prep_gat_layer(params["w1"], params["a_src1"], params["a_dst1"],
                            params["b1"], fin_pad=layer0["fout_pad"], ones_col=hidden)

    def fwd(x):
        x_p = jnp.zeros((n_pad, fin_pad), jnp.float32).at[:n, :fin].set(x)
        x_p = x_p.at[:, ones_col0].set(1.0).astype(jnp.bfloat16)
        h = gat_conv(x_p, adj_p, kidx, knnz, layer0, apply_elu=True,
                     out_dtype=jnp.bfloat16, tq=tq, tk=tk,
                     max_nnz=max_nnz, n_valid=n)           # x = F.elu(gat0(x, ei))
        out = gat_conv(h, adj_p, kidx, knnz, layer1, apply_elu=False,
                       out_dtype=jnp.float32, tq=tq, tk=tk,
                       max_nnz=max_nnz, n_valid=n)         # x = gat1(x, ei)
        return out[:n, :out_ch]                            # drop node / lane padding

    return jax.jit(fwd)


# ---------------------------------------------------------------------------
# Parameter init, adjacency helper, pure-JAX reference
# ---------------------------------------------------------------------------
def glorot(key, shape):
    fan_in, fan_out = shape[0], shape[1]
    limit = (6.0 / (fan_in + fan_out)) ** 0.5
    return jax.random.uniform(key, shape, jnp.float32, -limit, limit)


def init_gat_model_params(key, in_channels, hidden_dim, out_channels):
    ks = jax.random.split(key, 6)
    return {
        "w0": glorot(ks[0], (in_channels, hidden_dim)),
        "a_src0": glorot(ks[1], (hidden_dim, 1)),
        "a_dst0": glorot(ks[2], (hidden_dim, 1)),
        "b0": jnp.zeros((1, hidden_dim), jnp.float32),
        "w1": glorot(ks[3], (hidden_dim, out_channels)),
        "a_src1": glorot(ks[4], (out_channels, 1)),
        "a_dst1": glorot(ks[5], (out_channels, 1)),
        "b1": jnp.zeros((1, out_channels), jnp.float32),
    }


def edge_index_to_adj(edge_index, num_nodes):
    """Dense adjacency mask: adj[dst, src] = 1, plus self-loops (as in PyG GATConv)."""
    src, dst = edge_index[0], edge_index[1]
    adj = jnp.zeros((num_nodes, num_nodes), jnp.float32)
    adj = adj.at[dst, src].set(1.0)
    adj = adj.at[jnp.arange(num_nodes), jnp.arange(num_nodes)].set(1.0)
    return adj


def _bf(v):  # round-trip through bf16 to mirror kernel operand precision
    return v.astype(jnp.bfloat16).astype(jnp.float32)


def gat_reference(params, x, adj):
    """Dense pure-JAX reference (bf16-rounded operands, f32 math)."""
    def layer(h_in, w, a_src, a_dst, b, act):
        hq = _bf(h_in)
        h = hq @ _bf(w)
        s_dst = hq @ _bf(w @ a_dst)
        s_src = hq @ _bf(w @ a_src)
        e = s_dst + s_src.T
        e = jnp.where(e > 0, e, 0.2 * e)
        e = jnp.where(adj > 0, e, -jnp.inf)
        alpha = jax.nn.softmax(e, axis=-1)
        out = alpha @ h + b
        return jnp.where(out > 0, out, jnp.exp(out) - 1.0) if act else out

    h = layer(x, params["w0"], params["a_src0"], params["a_dst0"], params["b0"], True)
    return layer(h, params["w1"], params["a_src1"], params["a_dst1"], params["b1"], False)


# ---------------------------------------------------------------------------
if __name__ == "__main__":
    key = jax.random.PRNGKey(0)
    k_feat, k_edge, k_param = jax.random.split(key, 3)

    num_nodes = 200           # pads to 256 -> 2 dst tiles (both v7x cores busy)
    in_channels = 4
    hidden_dim = 32
    out_channels = 4
    num_edges = 1000

    x = jax.random.normal(k_feat, (num_nodes, in_channels), jnp.float32)
    edge_index = jax.random.randint(k_edge, (2, num_edges), 0, num_nodes,
                                    dtype=jnp.int32)
    adj = edge_index_to_adj(edge_index, num_nodes)
    params = init_gat_model_params(k_param, in_channels, hidden_dim, out_channels)

    graph = prep_graph(adj, num_nodes, tq=128, tk=128)   # once per graph
    forward = make_gat_forward(params, graph)            # jitted forward

    out = forward(x)
    out = jax.block_until_ready(out)

    assert out.shape == (num_nodes, out_channels)
    assert bool(jnp.all(jnp.isfinite(out)))

    ref = gat_reference(params, x, adj)
    assert jnp.allclose(out, ref, rtol=5e-2, atol=5e-2), \
        float(jnp.max(jnp.abs(out - ref)))

    print("KERNEL_OK")
</pallas_src>

<mosaic_0001>
module attributes {stable_mosaic.version = 11 : i64} {
  func.func @_proj_kernel(%arg0: i32, %arg1: memref<128x128xbf16, #tpu.memory_space<vmem>>, %arg2: memref<128x256xbf16, #tpu.memory_space<vmem>>, %arg3: memref<128x128xbf16, #tpu.memory_space<vmem>>, %arg4: memref<128x128xf32, #tpu.memory_space<vmem>>) attributes {dimension_semantics = [#tpu.dimension_semantics<parallel>], iteration_bounds = array<i64: 2>, scalar_prefetch = 0 : i64, scratch_operands = 0 : i64, tpu.core_type = #tpu.core_type<tc>, window_params = [{transform_indices = @transform_0, window_bounds = array<i64: 128, 128>}, {pipeline_mode = #tpu.pipeline_mode<synchronous>, transform_indices = @transform_1, window_bounds = array<i64: 128, 256>}, {transform_indices = @transform_2, window_bounds = array<i64: 128, 128>}, {transform_indices = @transform_3, window_bounds = array<i64: 128, 128>}]} {
    %c0 = arith.constant 0 : index
    %c0_0 = arith.constant 0 : index
    %0 = vector.load %arg1[%c0, %c0_0] : memref<128x128xbf16, #tpu.memory_space<vmem>>, vector<128x128xbf16>
    %c0_1 = arith.constant 0 : index
    %c0_2 = arith.constant 0 : index
    %1 = vector.load %arg2[%c0_1, %c0_2] : memref<128x256xbf16, #tpu.memory_space<vmem>>, vector<128x256xbf16>
    %cst = arith.constant dense<0.000000e+00> : vector<128x256xf32>
    %2 = tpu.matmul %0, %1, %cst {dimension_numbers = #tpu.dot_dimension_numbers<[1], [0], [0], [1], [0, 0, 1, 1], [], []>} : vector<128x128xbf16>, vector<128x256xbf16>, vector<128x256xf32> -> vector<128x256xf32>
    %3 = vector.extract_strided_slice %2 {offsets = [0, 0], sizes = [128, 128], strides = [1, 1]} : vector<128x256xf32> to vector<128x128xf32>
    %4 = arith.truncf %3 : vector<128x128xf32> to vector<128x128xbf16>
    %c0_3 = arith.constant 0 : index
    %c0_4 = arith.constant 0 : index
    %5 = vector.load %arg3[%c0_3, %c0_4] : memref<128x128xbf16, #tpu.memory_space<vmem>>, vector<128x128xbf16>
    tpu.vector_store %arg3[%c0_3, %c0_4], %4 {strides = array<i32>} : memref<128x128xbf16, #tpu.memory_space<vmem>>, vector<128x128xbf16>,
    %6 = vector.extract_strided_slice %2 {offsets = [0, 128], sizes = [128, 128], strides = [1, 1]} : vector<128x256xf32> to vector<128x128xf32>
    %c0_5 = arith.constant 0 : index
    %c0_6 = arith.constant 0 : index
    %7 = vector.load %arg4[%c0_5, %c0_6] : memref<128x128xf32, #tpu.memory_space<vmem>>, vector<128x128xf32>
    tpu.vector_store %arg4[%c0_5, %c0_6], %6 {strides = array<i32>} : memref<128x128xf32, #tpu.memory_space<vmem>>, vector<128x128xf32>,
    return
  }
  func.func @transform_0(%arg0: i32) -> (i32, i32) {
    %c0_i32 = arith.constant 0 : i32
    %c0_i32_0 = arith.constant 0 : i32
    return %arg0, %c0_i32 : i32, i32
  }
  func.func @transform_1(%arg0: i32) -> (i32, i32) {
    %c0_i32 = arith.constant 0 : i32
    %c0_i32_0 = arith.constant 0 : i32
    %c0_i32_1 = arith.constant 0 : i32
    return %c0_i32, %c0_i32_0 : i32, i32
  }
  func.func @transform_2(%arg0: i32) -> (i32, i32) {
    %c0_i32 = arith.constant 0 : i32
    %c0_i32_0 = arith.constant 0 : i32
    return %arg0, %c0_i32 : i32, i32
  }
  func.func @transform_3(%arg0: i32) -> (i32, i32) {
    %c0_i32 = arith.constant 0 : i32
    %c0_i32_0 = arith.constant 0 : i32
    return %arg0, %c0_i32 : i32, i32
  }
}

module attributes {stable_mosaic.version = 11 : i64} {
  func.func @_gat_attn_kernel(%arg0: i32, %arg1: i32, %arg2: memref<2x2xi32, #tpu.memory_space<smem>>, %arg3: memref<2xi32, #tpu.memory_space<smem>>, %arg4: memref<128x1xf32, #tpu.memory_space<vmem>>, %arg5: memref<128x1xf32, #tpu.memory_space<vmem>>, %arg6: memref<1x128xf32, #tpu.memory_space<vmem>>, %arg7: memref<128x128xbf16, #tpu.memory_space<vmem>>, %arg8: memref<128x128xi8, #tpu.memory_space<vmem>>, %arg9: memref<1x128xf32, #tpu.memory_space<vmem>>, %arg10: memref<128x128xbf16, #tpu.memory_space<vmem>>, %arg11: memref<128x128xf32, #tpu.memory_space<vmem>>) attributes {dimension_semantics = [#tpu.dimension_semantics<parallel>, #tpu.dimension_semantics<arbitrary>], iteration_bounds = array<i64: 2, 2>, scalar_prefetch = 2 : i64, scratch_operands = 1 : i64, tpu.core_type = #tpu.core_type<tc>, window_params = [{transform_indices = @transform_0, window_bounds = array<i64: 128, 1>}, {transform_indices = @transform_1, window_bounds = array<i64: 128, 1>}, {transform_indices = @transform_2, window_bounds = array<i64: 1, 128>}, {transform_indices = @transform_3, window_bounds = array<i64: 128, 128>}, {transform_indices = @transform_4, window_bounds = array<i64: 128, 128>}, {pipeline_mode = #tpu.pipeline_mode<synchronous>, transform_indices = @transform_5, window_bounds = array<i64: 1, 128>}, {transform_indices = @transform_6, window_bounds = array<i64: 128, 128>}]} {
    %c0_i32 = arith.constant 0 : i32
    %0 = arith.cmpi eq, %arg1, %c0_i32 : i32
    %1 = arith.extui %0 : i1 to i32
    %c0_i32_0 = arith.constant 0 : i32
    %2 = arith.cmpi ne, %1, %c0_i32_0 : i32
    scf.if %2 {
      %cst = arith.constant 0.000000e+00 : f32
      %11 = vector.broadcast %cst : f32 to vector<128x128xf32>
      %c0 = arith.constant 0 : index
      %c0_3 = arith.constant 0 : index
      %12 = vector.load %arg11[%c0, %c0_3] : memref<128x128xf32, #tpu.memory_space<vmem>>, vector<128x128xf32>
      tpu.vector_store %arg11[%c0, %c0_3], %11 {strides = array<i32>} : memref<128x128xf32, #tpu.memory_space<vmem>>, vector<128x128xf32>,
    } else {
    }
    %3 = arith.index_cast %arg0 : i32 to index
    %4 = memref.load %arg3[%3] : memref<2xi32, #tpu.memory_space<smem>>
    %5 = arith.cmpi slt, %arg1, %4 : i32
    %6 = arith.extui %5 : i1 to i32
    %c0_i32_1 = arith.constant 0 : i32
    %7 = arith.cmpi ne, %6, %c0_i32_1 : i32
    scf.if %7 {
      %c0 = arith.constant 0 : index
      %c0_3 = arith.constant 0 : index
      %11 = vector.load %arg4[%c0, %c0_3] : memref<128x1xf32, #tpu.memory_space<vmem>>, vector<128x1xf32>
      %c0_4 = arith.constant 0 : index
      %c0_5 = arith.constant 0 : index
      %12 = vector.load %arg6[%c0_4, %c0_5] : memref<1x128xf32, #tpu.memory_space<vmem>>, vector<1x128xf32>
      %13 = vector.broadcast %11 : vector<128x1xf32> to vector<128x128xf32>
      %14 = vector.broadcast %12 : vector<1x128xf32> to vector<128x128xf32>
      %15 = arith.addf %13, %14 : vector<128x128xf32>
      %cst = arith.constant 0.000000e+00 : f32
      %16 = vector.broadcast %cst : f32 to vector<128x128xf32>
      %17 = arith.cmpf ogt, %15, %16 : vector<128x128xf32>
      %cst_6 = arith.constant 2.000000e-01 : f32
      %18 = vector.broadcast %cst_6 : f32 to vector<128x128xf32>
      %19 = arith.mulf %18, %15 : vector<128x128xf32>
      %20 = arith.select %17, %15, %19 : vector<128x128xi1>, vector<128x128xf32>
      %c0_7 = arith.constant 0 : index
      %c0_8 = arith.constant 0 : index
      %21 = vector.load %arg5[%c0_7, %c0_8] : memref<128x1xf32, #tpu.memory_space<vmem>>, vector<128x1xf32>
      %22 = vector.broadcast %21 : vector<128x1xf32> to vector<128x128xf32>
      %23 = arith.subf %20, %22 : vector<128x128xf32>
      %cst_9 = arith.constant 0.000000e+00 : f32
      %24 = vector.broadcast %cst_9 : f32 to vector<128x128xf32>
      %25 = arith.minimumf %23, %24 : vector<128x128xf32>
      %26 = math.exp %25 : vector<128x128xf32>
      %27 = arith.truncf %26 : vector<128x128xf32> to vector<128x128xbf16>
      %c0_10 = arith.constant 0 : index
      %c0_11 = arith.constant 0 : index
      %28 = vector.load %arg8[%c0_10, %c0_11] : memref<128x128xi8, #tpu.memory_space<vmem>>, vector<128x128xi8>
      %29 = arith.sitofp %28 : vector<128x128xi8> to vector<128x128xbf16>
      %30 = arith.mulf %27, %29 : vector<128x128xbf16>
      %c0_12 = arith.constant 0 : index
      %c0_13 = arith.constant 0 : index
      %31 = vector.load %arg11[%c0_12, %c0_13] : memref<128x128xf32, #tpu.memory_space<vmem>>, vector<128x128xf32>
      %c0_14 = arith.constant 0 : index
      %c0_15 = arith.constant 0 : index
      %32 = vector.load %arg7[%c0_14, %c0_15] : memref<128x128xbf16, #tpu.memory_space<vmem>>, vector<128x128xbf16>
      %cst_16 = arith.constant dense<0.000000e+00> : vector<128x128xf32>
      %33 = tpu.matmul %30, %32, %cst_16 {dimension_numbers = #tpu.dot_dimension_numbers<[1], [0], [0], [1], [0, 0, 1, 1], [], []>} : vector<128x128xbf16>, vector<128x128xbf16>, vector<128x128xf32> -> vector<128x128xf32>
      %34 = arith.addf %31, %33 : vector<128x128xf32>
      %c0_17 = arith.constant 0 : index
      %c0_18 = arith.constant 0 : index
      %35 = vector.load %arg11[%c0_17, %c0_18] : memref<128x128xf32, #tpu.memory_space<vmem>>, vector<128x128xf32>
      tpu.vector_store %arg11[%c0_17, %c0_18], %34 {strides = array<i32>} : memref<128x128xf32, #tpu.memory_space<vmem>>, vector<128x128xf32>,
    } else {
    }
    %c1_i32 = arith.constant 1 : i32
    %8 = arith.cmpi eq, %arg1, %c1_i32 : i32
    %9 = arith.extui %8 : i1 to i32
    %c0_i32_2 = arith.constant 0 : i32
    %10 = arith.cmpi ne, %9, %c0_i32_2 : i32
    scf.if %10 {
      %c0 = arith.constant 0 : index
      %c0_3 = arith.constant 0 : index
      %11 = vector.load %arg11[%c0, %c0_3] : memref<128x128xf32, #tpu.memory_space<vmem>>, vector<128x128xf32>
      %12 = vector.extract_strided_slice %11 {offsets = [0, 32], sizes = [128, 1], strides = [1, 1]} : vector<128x128xf32> to vector<128x1xf32>
      %cst = arith.constant 9.99999968E-21 : f32
      %13 = vector.broadcast %cst : f32 to vector<128x1xf32>
      %14 = arith.maximumf %12, %13 : vector<128x1xf32>
      %15 = tpu.reciprocal %14 {approx = true} : vector<128x1xf32> -> vector<128x1xf32>
      %16 = vector.broadcast %15 : vector<128x1xf32> to vector<128x128xf32>
      %17 = arith.mulf %11, %16 : vector<128x128xf32>
      %c0_4 = arith.constant 0 : index
      %c0_5 = arith.constant 0 : index
      %18 = vector.load %arg9[%c0_4, %c0_5] : memref<1x128xf32, #tpu.memory_space<vmem>>, vector<1x128xf32>
      %19 = vector.broadcast %18 : vector<1x128xf32> to vector<128x128xf32>
      %20 = arith.addf %17, %19 : vector<128x128xf32>
      %21 = tpu.iota {dimensions = array<i32: 1>} : vector<128x128xi32>
      %c32_i32 = arith.constant 32 : i32
      %22 = vector.broadcast %c32_i32 : i32 to vector<128x128xi32>
      %23 = arith.cmpi eq, %21, %22 : vector<128x128xi32>
      %cst_6 = arith.constant 1.000000e+00 : f32
      %24 = vector.broadcast %cst_6 : f32 to vector<128x128xf32>
      %25 = arith.select %23, %24, %20 : vector<128x128xi1>, vector<128x128xf32>
      %cst_7 = arith.constant 0.000000e+00 : f32
      %26 = vector.broadcast %cst_7 : f32 to vector<128x128xf32>
      %27 = arith.cmpf ogt, %25, %26 : vector<128x128xf32>
      %28 = math.exp %25 : vector<128x128xf32>
      %cst_8 = arith.constant 1.000000e+00 : f32
      %29 = vector.broadcast %cst_8 : f32 to vector<128x128xf32>
      %30 = arith.subf %28, %29 : vector<128x128xf32>
      %31 = arith.select %27, %25, %30 : vector<128x128xi1>, vector<128x128xf32>
      %32 = arith.truncf %31 : vector<128x128xf32> to vector<128x128xbf16>
      %c0_9 = arith.constant 0 : index
      %c0_10 = arith.constant 0 : index
      %33 = vector.load %arg10[%c0_9, %c0_10] : memref<128x128xbf16, #tpu.memory_space<vmem>>, vector<128x128xbf16>
      tpu.vector_store %arg10[%c0_9, %c0_10], %32 {strides = array<i32>} : memref<128x128xbf16, #tpu.memory_space<vmem>>, vector<128x128xbf16>,
    } else {
    }
    return
  }
  func.func @transform_0(%arg0: i32, %arg1: i32, %arg2: memref<2x2xi32, #tpu.memory_space<smem>>, %arg3: memref<2xi32, #tpu.memory_space<smem>>) -> (i32, i32) {
    %c0_i32 = arith.constant 0 : i32
    %c0_i32_0 = arith.constant 0 : i32
    return %arg0, %c0_i32 : i32, i32
  }
  func.func @transform_1(%arg0: i32, %arg1: i32, %arg2: memref<2x2xi32, #tpu.memory_space<smem>>, %arg3: memref<2xi32, #tpu.memory_space<smem>>) -> (i32, i32) {
    %c0_i32 = arith.constant 0 : i32
    %c0_i32_0 = arith.constant 0 : i32
    return %arg0, %c0_i32 : i32, i32
  }
  func.func @transform_2(%arg0: i32, %arg1: i32, %arg2: memref<2x2xi32, #tpu.memory_space<smem>>, %arg3: memref<2xi32, #tpu.memory_space<smem>>) -> (i32, i32) {
    %0 = arith.index_cast %arg0 : i32 to index
    %1 = arith.index_cast %arg1 : i32 to index
    %2 = memref.load %arg2[%0, %1] : memref<2x2xi32, #tpu.memory_space<smem>>
    %c0_i32 = arith.constant 0 : i32
    %c0_i32_0 = arith.constant 0 : i32
    return %c0_i32, %2 : i32, i32
  }
  func.func @transform_3(%arg0: i32, %arg1: i32, %arg2: memref<2x2xi32, #tpu.memory_space<smem>>, %arg3: memref<2xi32, #tpu.memory_space<smem>>) -> (i32, i32) {
    %0 = arith.index_cast %arg0 : i32 to index
    %1 = arith.index_cast %arg1 : i32 to index
    %2 = memref.load %arg2[%0, %1] : memref<2x2xi32, #tpu.memory_space<smem>>
    %c0_i32 = arith.constant 0 : i32
    %c0_i32_0 = arith.constant 0 : i32
    return %2, %c0_i32 : i32, i32
  }
  func.func @transform_4(%arg0: i32, %arg1: i32, %arg2: memref<2x2xi32, #tpu.memory_space<smem>>, %arg3: memref<2xi32, #tpu.memory_space<smem>>) -> (i32, i32) {
    %0 = arith.index_cast %arg0 : i32 to index
    %1 = arith.index_cast %arg1 : i32 to index
    %2 = memref.load %arg2[%0, %1] : memref<2x2xi32, #tpu.memory_space<smem>>
    %c0_i32 = arith.constant 0 : i32
    return %arg0, %2 : i32, i32
  }
  func.func @transform_5(%arg0: i32, %arg1: i32, %arg2: memref<2x2xi32, #tpu.memory_space<smem>>, %arg3: memref<2xi32, #tpu.memory_space<smem>>) -> (i32, i32) {
    %c0_i32 = arith.constant 0 : i32
    %c0_i32_0 = arith.constant 0 : i32
    %c0_i32_1 = arith.constant 0 : i32
    return %c0_i32, %c0_i32_0 : i32, i32
  }
  func.func @transform_6(%arg0: i32, %arg1: i32, %arg2: memref<2x2xi32, #tpu.memory_space<smem>>, %arg3: memref<2xi32, #tpu.memory_space<smem>>) -> (i32, i32) {
    %c0_i32 = arith.constant 0 : i32
    %c0_i32_0 = arith.constant 0 : i32
    return %arg0, %c0_i32 : i32, i32
  }
}

module attributes {stable_mosaic.version = 11 : i64} {
  func.func @_gat_attn_kernel(%arg0: i32, %arg1: i32, %arg2: memref<2x2xi32, #tpu.memory_space<smem>>, %arg3: memref<2xi32, #tpu.memory_space<smem>>, %arg4: memref<128x1xf32, #tpu.memory_space<vmem>>, %arg5: memref<128x1xf32, #tpu.memory_space<vmem>>, %arg6: memref<1x128xf32, #tpu.memory_space<vmem>>, %arg7: memref<128x128xbf16, #tpu.memory_space<vmem>>, %arg8: memref<128x128xi8, #tpu.memory_space<vmem>>, %arg9: memref<1x128xf32, #tpu.memory_space<vmem>>, %arg10: memref<128x128xf32, #tpu.memory_space<vmem>>, %arg11: memref<128x128xf32, #tpu.memory_space<vmem>>) attributes {dimension_semantics = [#tpu.dimension_semantics<parallel>, #tpu.dimension_semantics<arbitrary>], iteration_bounds = array<i64: 2, 2>, scalar_prefetch = 2 : i64, scratch_operands = 1 : i64, tpu.core_type = #tpu.core_type<tc>, window_params = [{transform_indices = @transform_0, window_bounds = array<i64: 128, 1>}, {transform_indices = @transform_1, window_bounds = array<i64: 128, 1>}, {transform_indices = @transform_2, window_bounds = array<i64: 1, 128>}, {transform_indices = @transform_3, window_bounds = array<i64: 128, 128>}, {transform_indices = @transform_4, window_bounds = array<i64: 128, 128>}, {pipeline_mode = #tpu.pipeline_mode<synchronous>, transform_indices = @transform_5, window_bounds = array<i64: 1, 128>}, {transform_indices = @transform_6, window_bounds = array<i64: 128, 128>}]} {
    %c0_i32 = arith.constant 0 : i32
    %0 = arith.cmpi eq, %arg1, %c0_i32 : i32
    %1 = arith.extui %0 : i1 to i32
    %c0_i32_0 = arith.constant 0 : i32
    %2 = arith.cmpi ne, %1, %c0_i32_0 : i32
    scf.if %2 {
      %cst = arith.constant 0.000000e+00 : f32
      %11 = vector.broadcast %cst : f32 to vector<128x128xf32>
      %c0 = arith.constant 0 : index
      %c0_3 = arith.constant 0 : index
      %12 = vector.load %arg11[%c0, %c0_3] : memref<128x128xf32, #tpu.memory_space<vmem>>, vector<128x128xf32>
      tpu.vector_store %arg11[%c0, %c0_3], %11 {strides = array<i32>} : memref<128x128xf32, #tpu.memory_space<vmem>>, vector<128x128xf32>,
    } else {
    }
    %3 = arith.index_cast %arg0 : i32 to index
    %4 = memref.load %arg3[%3] : memref<2xi32, #tpu.memory_space<smem>>
    %5 = arith.cmpi slt, %arg1, %4 : i32
    %6 = arith.extui %5 : i1 to i32
    %c0_i32_1 = arith.constant 0 : i32
    %7 = arith.cmpi ne, %6, %c0_i32_1 : i32
    scf.if %7 {
      %c0 = arith.constant 0 : index
      %c0_3 = arith.constant 0 : index
      %11 = vector.load %arg4[%c0, %c0_3] : memref<128x1xf32, #tpu.memory_space<vmem>>, vector<128x1xf32>
      %c0_4 = arith.constant 0 : index
      %c0_5 = arith.constant 0 : index
      %12 = vector.load %arg6[%c0_4, %c0_5] : memref<1x128xf32, #tpu.memory_space<vmem>>, vector<1x128xf32>
      %13 = vector.broadcast %11 : vector<128x1xf32> to vector<128x128xf32>
      %14 = vector.broadcast %12 : vector<1x128xf32> to vector<128x128xf32>
      %15 = arith.addf %13, %14 : vector<128x128xf32>
      %cst = arith.constant 0.000000e+00 : f32
      %16 = vector.broadcast %cst : f32 to vector<128x128xf32>
      %17 = arith.cmpf ogt, %15, %16 : vector<128x128xf32>
      %cst_6 = arith.constant 2.000000e-01 : f32
      %18 = vector.broadcast %cst_6 : f32 to vector<128x128xf32>
      %19 = arith.mulf %18, %15 : vector<128x128xf32>
      %20 = arith.select %17, %15, %19 : vector<128x128xi1>, vector<128x128xf32>
      %c0_7 = arith.constant 0 : index
      %c0_8 = arith.constant 0 : index
      %21 = vector.load %arg5[%c0_7, %c0_8] : memref<128x1xf32, #tpu.memory_space<vmem>>, vector<128x1xf32>
      %22 = vector.broadcast %21 : vector<128x1xf32> to vector<128x128xf32>
      %23 = arith.subf %20, %22 : vector<128x128xf32>
      %cst_9 = arith.constant 0.000000e+00 : f32
      %24 = vector.broadcast %cst_9 : f32 to vector<128x128xf32>
      %25 = arith.minimumf %23, %24 : vector<128x128xf32>
      %26 = math.exp %25 : vector<128x128xf32>
      %27 = arith.truncf %26 : vector<128x128xf32> to vector<128x128xbf16>
      %c0_10 = arith.constant 0 : index
      %c0_11 = arith.constant 0 : index
      %28 = vector.load %arg8[%c0_10, %c0_11] : memref<128x128xi8, #tpu.memory_space<vmem>>, vector<128x128xi8>
      %29 = arith.sitofp %28 : vector<128x128xi8> to vector<128x128xbf16>
      %30 = arith.mulf %27, %29 : vector<128x128xbf16>
      %c0_12 = arith.constant 0 : index
      %c0_13 = arith.constant 0 : index
      %31 = vector.load %arg11[%c0_12, %c0_13] : memref<128x128xf32, #tpu.memory_space<vmem>>, vector<128x128xf32>
      %c0_14 = arith.constant 0 : index
      %c0_15 = arith.constant 0 : index
      %32 = vector.load %arg7[%c0_14, %c0_15] : memref<128x128xbf16, #tpu.memory_space<vmem>>, vector<128x128xbf16>
      %cst_16 = arith.constant dense<0.000000e+00> : vector<128x128xf32>
      %33 = tpu.matmul %30, %32, %cst_16 {dimension_numbers = #tpu.dot_dimension_numbers<[1], [0], [0], [1], [0, 0, 1, 1], [], []>} : vector<128x128xbf16>, vector<128x128xbf16>, vector<128x128xf32> -> vector<128x128xf32>
      %34 = arith.addf %31, %33 : vector<128x128xf32>
      %c0_17 = arith.constant 0 : index
      %c0_18 = arith.constant 0 : index
      %35 = vector.load %arg11[%c0_17, %c0_18] : memref<128x128xf32, #tpu.memory_space<vmem>>, vector<128x128xf32>
      tpu.vector_store %arg11[%c0_17, %c0_18], %34 {strides = array<i32>} : memref<128x128xf32, #tpu.memory_space<vmem>>, vector<128x128xf32>,
    } else {
    }
    %c1_i32 = arith.constant 1 : i32
    %8 = arith.cmpi eq, %arg1, %c1_i32 : i32
    %9 = arith.extui %8 : i1 to i32
    %c0_i32_2 = arith.constant 0 : i32
    %10 = arith.cmpi ne, %9, %c0_i32_2 : i32
    scf.if %10 {
      %c0 = arith.constant 0 : index
      %c0_3 = arith.constant 0 : index
      %11 = vector.load %arg11[%c0, %c0_3] : memref<128x128xf32, #tpu.memory_space<vmem>>, vector<128x128xf32>
      %12 = vector.extract_strided_slice %11 {offsets = [0, 4], sizes = [128, 1], strides = [1, 1]} : vector<128x128xf32> to vector<128x1xf32>
      %cst = arith.constant 9.99999968E-21 : f32
      %13 = vector.broadcast %cst : f32 to vector<128x1xf32>
      %14 = arith.maximumf %12, %13 : vector<128x1xf32>
      %15 = tpu.reciprocal %14 {approx = true} : vector<128x1xf32> -> vector<128x1xf32>
      %16 = vector.broadcast %15 : vector<128x1xf32> to vector<128x128xf32>
      %17 = arith.mulf %11, %16 : vector<128x128xf32>
      %c0_4 = arith.constant 0 : index
      %c0_5 = arith.constant 0 : index
      %18 = vector.load %arg9[%c0_4, %c0_5] : memref<1x128xf32, #tpu.memory_space<vmem>>, vector<1x128xf32>
      %19 = vector.broadcast %18 : vector<1x128xf32> to vector<128x128xf32>
      %20 = arith.addf %17, %19 : vector<128x128xf32>
      %21 = tpu.iota {dimensions = array<i32: 1>} : vector<128x128xi32>
      %c4_i32 = arith.constant 4 : i32
      %22 = vector.broadcast %c4_i32 : i32 to vector<128x128xi32>
      %23 = arith.cmpi eq, %21, %22 : vector<128x128xi32>
      %cst_6 = arith.constant 1.000000e+00 : f32
      %24 = vector.broadcast %cst_6 : f32 to vector<128x128xf32>
      %25 = arith.select %23, %24, %20 : vector<128x128xi1>, vector<128x128xf32>
      %c0_7 = arith.constant 0 : index
      %c0_8 = arith.constant 0 : index
      %26 = vector.load %arg10[%c0_7, %c0_8] : memref<128x128xf32, #tpu.memory_space<vmem>>, vector<128x128xf32>
      tpu.vector_store %arg10[%c0_7, %c0_8], %25 {strides = array<i32>} : memref<128x128xf32, #tpu.memory_space<vmem>>, vector<128x128xf32>,
    } else {
    }
    return
  }
  func.func @transform_0(%arg0: i32, %arg1: i32, %arg2: memref<2x2xi32, #tpu.memory_space<smem>>, %arg3: memref<2xi32, #tpu.memory_space<smem>>) -> (i32, i32) {
    %c0_i32 = arith.constant 0 : i32
    %c0_i32_0 = arith.constant 0 : i32
    return %arg0, %c0_i32 : i32, i32
  }
  func.func @transform_1(%arg0: i32, %arg1: i32, %arg2: memref<2x2xi32, #tpu.memory_space<smem>>, %arg3: memref<2xi32, #tpu.memory_space<smem>>) -> (i32, i32) {
    %c0_i32 = arith.constant 0 : i32
    %c0_i32_0 = arith.constant 0 : i32
    return %arg0, %c0_i32 : i32, i32
  }
  func.func @transform_2(%arg0: i32, %arg1: i32, %arg2: memref<2x2xi32, #tpu.memory_space<smem>>, %arg3: memref<2xi32, #tpu.memory_space<smem>>) -> (i32, i32) {
    %0 = arith.index_cast %arg0 : i32 to index
    %1 = arith.index_cast %arg1 : i32 to index
    %2 = memref.load %arg2[%0, %1] : memref<2x2xi32, #tpu.memory_space<smem>>
    %c0_i32 = arith.constant 0 : i32
    %c0_i32_0 = arith.constant 0 : i32
    return %c0_i32, %2 : i32, i32
  }
  func.func @transform_3(%arg0: i32, %arg1: i32, %arg2: memref<2x2xi32, #tpu.memory_space<smem>>, %arg3: memref<2xi32, #tpu.memory_space<smem>>) -> (i32, i32) {
    %0 = arith.index_cast %arg0 : i32 to index
    %1 = arith.index_cast %arg1 : i32 to index
    %2 = memref.load %arg2[%0, %1] : memref<2x2xi32, #tpu.memory_space<smem>>
    %c0_i32 = arith.constant 0 : i32
    %c0_i32_0 = arith.constant 0 : i32
    return %2, %c0_i32 : i32, i32
  }
  func.func @transform_4(%arg0: i32, %arg1: i32, %arg2: memref<2x2xi32, #tpu.memory_space<smem>>, %arg3: memref<2xi32, #tpu.memory_space<smem>>) -> (i32, i32) {
    %0 = arith.index_cast %arg0 : i32 to index
    %1 = arith.index_cast %arg1 : i32 to index
    %2 = memref.load %arg2[%0, %1] : memref<2x2xi32, #tpu.memory_space<smem>>
    %c0_i32 = arith.constant 0 : i32
    return %arg0, %2 : i32, i32
  }
  func.func @transform_5(%arg0: i32, %arg1: i32, %arg2: memref<2x2xi32, #tpu.memory_space<smem>>, %arg3: memref<2xi32, #tpu.memory_space<smem>>) -> (i32, i32) {
    %c0_i32 = arith.constant 0 : i32
    %c0_i32_0 = arith.constant 0 : i32
    %c0_i32_1 = arith.constant 0 : i32
    return %c0_i32, %c0_i32_0 : i32, i32
  }
  func.func @transform_6(%arg0: i32, %arg1: i32, %arg2: memref<2x2xi32, #tpu.memory_space<smem>>, %arg3: memref<2xi32, #tpu.memory_space<smem>>) -> (i32, i32) {
    %c0_i32 = arith.constant 0 : i32
    %c0_i32_0 = arith.constant 0 : i32
    return %arg0, %c0_i32 : i32, i32
  }
}

</mosaic_0001>

<bundles_post_ra>
// kernel: fwd.4
= control target key start
LH: loop header
LB: loop body
LE: loop exit
PB: predicated region body
PF: predicated region fallthrough
CT: control target
= control target key end

     0   :  { %s850_s12 = smov 0   ;;  %s972_s0 = inlined_call_operand.vmem [shape: bf16[256,128], index: 0, kind: input, shape index: {}]   ;;  %s973_s1 = inlined_call_operand.vmem [shape: bf16[128,256], index: 1, kind: input, shape index: {}]   ;;  %s974_s2 = inlined_call_operand.vmem [shape: bf16[256,128], index: 2, kind: output, shape index: {0}]   ;;  %s975_s3 = inlined_call_operand.vmem [shape: f32[256,128], index: 3, kind: output, shape index: {1}]  }
   0x1 LB: > { %s648_s13 = sadd.s32 4294967295, %s827_s12   ;;  %p652_p0 = scmp.ge.s32.totalorder %s827_s12, 1  ;;  %s827_s12 = sphi %s850_s12, %s14_s12  }
   0x2   : > { %p141_p1 = scmp.lt.s32.totalorder %s827_s12, 3 }
   0x4   : > { %p142_p2 = pnand %p652_p0, %p141_p1 }
   0x5   : > { %s653_s16 = sshll.u32 (!%p142_p2), %s648_s13, 4 }
   0x6   : > { %145 = sbr.rel (%p142_p2) target bundleno = 270 (0x10e), region = 28  ;;  %p171_p3 = scmp.lt.s32.totalorder (!%p142_p2), %s653_s16, 31 }
   0xb   : > { %v789_v0 = vld [vmem:[%s973_s1 + $0x74] ss:$8 sps:$4 sm:$0xff]   ;;  %v791_v1 = vld [vmem:[%s973_s1 + $0x70] ss:$8 sps:$4 sm:$0xff]   ;;  %v829_v2 = vmov 0   ;;  %s977_s16 = smov (!%p171_p3, %s653_s16), 31 }
   0xc   : > { %381 = vmatprep.mubr.bf16.mxu0 %v829_v2  ;;  %421 = vmatprep.mubr.bf16.mxu1 %v829_v2  ;;  %v792_v3 = vld [vmem:[%s973_s1 + $0x64] ss:$8 sps:$4 sm:$0xff]   ;;  %v794_v4 = vld [vmem:[%s973_s1 + $0x60] ss:$8 sps:$4 sm:$0xff]   ;;  %v795_v5 = vld [vmem:[%s973_s1 + $0x54] ss:$8 sps:$4 sm:$0xff]  }
   0xd   : > { %349 = vmatprep.subr.bf16.mxu0 %v789_v0  ;;  %764 = vmatprep.subr.bf16.mxu1 %v789_v0  ;;  %s654_s25 = sshll.u32 %s977_s16, 2  ;;  %v797_v6 = vld [vmem:[%s973_s1 + $0x50] ss:$8 sps:$4 sm:$0xff]   ;;  %v798_v7 = vld [vmem:[%s973_s1 + $0x44] ss:$8 sps:$4 sm:$0xff]   ;;  %s658_s27 = sshll.u32 %s977_s16, 3 }
   0xe   : > { %350 = vmatpush1.bf16.msra.mxu0 %v791_v1  ;;  %772 = vmatpush1.bf16.msra.mxu1 %v791_v1  ;;  %s889_s5 = scalar_lea.vmem %s972_s0, %s654_s25  ;;  %v800_v8 = vld [vmem:[%s973_s1 + $0x40] ss:$8 sps:$4 sm:$0xff]   ;;  %v801_v9 = vld [vmem:[%s973_s1 + $0x34] ss:$8 sps:$4 sm:$0xff]   ;;  %v803_v10 = vld [vmem:[%s973_s1 + $0x30] ss:$8 sps:$4 sm:$0xff]   ;;  %s936_s30 = scalar_lea.vmem %s975_s3, %s658_s27 }
   0xf   : > { %351 = vmatprep.subr.bf16.mxu0 %v792_v3  ;;  %765 = vmatprep.subr.bf16.mxu1 %v792_v3  ;;  %v804_v11 = vld [vmem:[%s973_s1 + $0x24] ss:$8 sps:$4 sm:$0xff]   ;;  %v806_v12 = vld [vmem:[%s973_s1 + $0x20] ss:$8 sps:$4 sm:$0xff]   ;;  %v807_v13 = vld [vmem:[%s973_s1 + $0x14] ss:$8 sps:$4 sm:$0xff]   ;;  %s945_s6 = scalar_lea.vmem %s974_s2, %s654_s25 }
  0x10   : > { %v809_v14 = vld [vmem:[%s973_s1 + $0x10] ss:$8 sps:$4 sm:$0xff]   ;;  %v810_v15 = vld [vmem:[%s973_s1 + $0x4] ss:$8 sps:$4 sm:$0xff]   ;;  %v812_v16 = vld [vmem:[%s973_s1] ss:$8 sps:$4 sm:$0xff]  }
  0x11   : > { %v813_v17 = vld [vmem:[%s889_s5] sm:$0xff]   ;;  %v815_v19 = vld [vmem:[%s889_s5 + $0x8] sm:$0xff]   ;;  %v817_v21 = vld [vmem:[%s889_s5 + $0x10] sm:$0xff]  }
  0x12   : > { %352 = vmatpush1.bf16.msra.mxu0 %v794_v4  ;;  %773 = vmatpush1.bf16.msra.mxu1 %v794_v4  ;;  %v814_v18 = vld [vmem:[%s889_s5 + $0x20] sm:$0xff]   ;;  %v816_v20 = vld [vmem:[%s889_s5 + $0x28] sm:$0xff]   ;;  %v818_v22 = vld [vmem:[%s889_s5 + $0x30] sm:$0xff]  }
  0x13   : > { %353 = vmatprep.subr.bf16.mxu0 %v795_v5  ;;  %766 = vmatprep.subr.bf16.mxu1 %v795_v5  ;;  %v819_v23 = vld [vmem:[%s889_s5 + $0x18] sm:$0xff]  }
  0x14   : > { %v820_v24 = vld [vmem:[%s889_s5 + $0x38] sm:$0xff]  }
  0x16   : > { %354 = vmatpush1.bf16.msra.mxu0 %v797_v6  ;;  %774 = vmatpush1.bf16.msra.mxu1 %v797_v6 }
  0x17   : > { %355 = vmatprep.subr.bf16.mxu0 %v798_v7  ;;  %767 = vmatprep.subr.bf16.mxu1 %v798_v7 }
  0x1a   : > { %356 = vmatpush1.bf16.msra.mxu0 %v800_v8  ;;  %775 = vmatpush1.bf16.msra.mxu1 %v800_v8 }
  0x1b   : > { %357 = vmatprep.subr.bf16.mxu0 %v801_v9  ;;  %768 = vmatprep.subr.bf16.mxu1 %v801_v9 }
  0x1e   : > { %358 = vmatpush1.bf16.msra.mxu0 %v803_v10  ;;  %776 = vmatpush1.bf16.msra.mxu1 %v803_v10 }
  0x1f   : > { %359 = vmatprep.subr.bf16.mxu0 %v804_v11  ;;  %769 = vmatprep.subr.bf16.mxu1 %v804_v11 }
  0x22   : > { %360 = vmatpush1.bf16.msra.mxu0 %v806_v12  ;;  %777 = vmatpush1.bf16.msra.mxu1 %v806_v12 }
  0x23   : > { %361 = vmatprep.subr.bf16.mxu0 %v807_v13  ;;  %770 = vmatprep.subr.bf16.mxu1 %v807_v13 }
  0x26   : > { %362 = vmatpush1.bf16.msra.mxu0 %v809_v14  ;;  %778 = vmatpush1.bf16.msra.mxu1 %v809_v14 }
  0x27   : > { %363 = vmatprep.subr.bf16.mxu0 %v810_v15  ;;  %771 = vmatprep.subr.bf16.mxu1 %v810_v15 }
  0x2a   : > { %364 = vmatpush1.bf16.msra.mxu0 %v812_v16  ;;  %779 = vmatpush1.bf16.msra.mxu1 %v812_v16 }
  0x2d   : > { %382 = vmatmul.mubr.bf16.vlgmr.msra.gmra.mxu0 %v813_v17  ;;  %422 = vmatmul.mubr.bf16.vlgmr.msra.gmra.mxu1 %v814_v18 }
  0x2e   : > { %391 = vmatprep.mubr.bf16.mxu0 %v829_v2  ;;  %431 = vmatprep.mubr.bf16.mxu1 %v829_v2 }
  0x35   : > { %392 = vmatmul.mubr.bf16.gmra.mxu0 %v815_v19  ;;  %432 = vmatmul.mubr.bf16.gmra.mxu1 %v816_v20 }
  0x36   : > { %401 = vmatprep.mubr.bf16.mxu0 %v829_v2  ;;  %441 = vmatprep.mubr.bf16.mxu1 %v829_v2 }
  0x3d   : > { %402 = vmatmul.mubr.bf16.gmra.mxu0 %v817_v21  ;;  %442 = vmatmul.mubr.bf16.gmra.mxu1 %v818_v22 }
  0x3e   : > { %411 = vmatprep.mubr.bf16.mxu0 %v829_v2  ;;  %451 = vmatprep.mubr.bf16.mxu1 %v829_v2 }
  0x45   : > { %412 = vmatmul.mubr.bf16.gmra.mxu0 %v819_v23  ;;  %452 = vmatmul.mubr.bf16.gmra.mxu1 %v820_v24 }
  0xed   : > { %v383_v25 = vpop.f32.mrf.mxu0  ;;  %v423_v26 = vpop.f32.mrf.mxu1 }
  0xef   : > { %v385_v27 = vpop.f32.mrf.mxu0  ;;  %v425_v28 = vpop.f32.mrf.mxu1 }
  0xf0   : > { %542 = vst [vmem:[%s936_s30] sm:$0xff] %v385_v27  ;;  %550 = vst [vmem:[%s936_s30 + $0x40] sm:$0xff] %v425_v28 }
  0xf1   : > { %v387_v29 = vpop.f32.mrf.mxu0  ;;  %v427_v30 = vpop.f32.mrf.mxu1 }
  0xf2   : > { %v720_v31 = vpack.c.bf16 %v387_v29, %v383_v25  ;;  %v740_v32 = vpack.c.bf16 %v427_v30, %v423_v26 }
  0xf3   : > { %v389_v33 = vpop.f32.mrf.mxu0  ;;  %v429_v34 = vpop.f32.mrf.mxu1 }
  0xf4   : > { %721 = vst [vmem:[%s945_s6] sm:$0xff] %v720_v31   ;;  %760 = vst [vmem:[%s945_s6 + $0x20] sm:$0xff] %v740_v32  }
  0xf5   : > { %543 = vst [vmem:[%s936_s30 + $0x8] sm:$0xff] %v389_v33  ;;  %551 = vst [vmem:[%s936_s30 + $0x48] sm:$0xff] %v429_v34  ;;  %v393_v35 = vpop.f32.mrf.mxu0  ;;  %v433_v36 = vpop.f32.mrf.mxu1 }
  0xf7   : > { %v395_v37 = vpop.f32.mrf.mxu0  ;;  %v435_v38 = vpop.f32.mrf.mxu1 }
  0xf8   : > { %544 = vst [vmem:[%s936_s30 + $0x10] sm:$0xff] %v395_v37  ;;  %552 = vst [vmem:[%s936_s30 + $0x50] sm:$0xff] %v435_v38 }
  0xf9   : > { %v397_v39 = vpop.f32.mrf.mxu0  ;;  %v437_v40 = vpop.f32.mrf.mxu1 }
  0xfa   : > { %v725_v41 = vpack.c.bf16 %v397_v39, %v393_v35  ;;  %v745_v42 = vpack.c.bf16 %v437_v40, %v433_v36 }
  0xfb   : > { %v399_v43 = vpop.f32.mrf.mxu0  ;;  %v439_v44 = vpop.f32.mrf.mxu1 }
  0xfc   : > { %757 = vst [vmem:[%s945_s6 + $0x8] sm:$0xff] %v725_v41   ;;  %761 = vst [vmem:[%s945_s6 + $0x28] sm:$0xff] %v745_v42  }
  0xfd   : > { %545 = vst [vmem:[%s936_s30 + $0x18] sm:$0xff] %v399_v43  ;;  %553 = vst [vmem:[%s936_s30 + $0x58] sm:$0xff] %v439_v44  ;;  %v403_v45 = vpop.f32.mrf.mxu0  ;;  %v443_v46 = vpop.f32.mrf.mxu1 }
  0xff   : > { %v405_v47 = vpop.f32.mrf.mxu0  ;;  %v445_v48 = vpop.f32.mrf.mxu1 }
 0x100   : > { %546 = vst [vmem:[%s936_s30 + $0x20] sm:$0xff] %v405_v47  ;;  %554 = vst [vmem:[%s936_s30 + $0x60] sm:$0xff] %v445_v48 }
 0x101   : > { %v407_v49 = vpop.f32.mrf.mxu0  ;;  %v447_v50 = vpop.f32.mrf.mxu1 }
 0x102   : > { %v730_v51 = vpack.c.bf16 %v407_v49, %v403_v45  ;;  %v750_v52 = vpack.c.bf16 %v447_v50, %v443_v46 }
 0x103   : > { %v409_v53 = vpop.f32.mrf.mxu0  ;;  %v449_v54 = vpop.f32.mrf.mxu1 }
 0x104   : > { %758 = vst [vmem:[%s945_s6 + $0x10] sm:$0xff] %v730_v51   ;;  %762 = vst [vmem:[%s945_s6 + $0x30] sm:$0xff] %v750_v52  }
 0x105   : > { %547 = vst [vmem:[%s936_s30 + $0x28] sm:$0xff] %v409_v53  ;;  %555 = vst [vmem:[%s936_s30 + $0x68] sm:$0xff] %v449_v54  ;;  %v413_v55 = vpop.f32.mrf.mxu0  ;;  %v453_v56 = vpop.f32.mrf.mxu1 }
 0x107   : > { %v415_v57 = vpop.f32.mrf.mxu0  ;;  %v455_v58 = vpop.f32.mrf.mxu1 }
 0x108   : > { %548 = vst [vmem:[%s936_s30 + $0x30] sm:$0xff] %v415_v57  ;;  %556 = vst [vmem:[%s936_s30 + $0x70] sm:$0xff] %v455_v58 }
 0x109   : > { %v417_v59 = vpop.f32.mrf.mxu0  ;;  %v457_v60 = vpop.f32.mrf.mxu1 }
 0x10a   : > { %v735_v61 = vpack.c.bf16 %v417_v59, %v413_v55  ;;  %v755_v62 = vpack.c.bf16 %v457_v60, %v453_v56 }
 0x10b   : > { %v419_v63 = vpop.f32.mrf.mxu0  ;;  %v459_v0 = vpop.f32.mrf.mxu1 }
 0x10c   : > { %759 = vst [vmem:[%s945_s6 + $0x18] sm:$0xff] %v735_v61   ;;  %763 = vst [vmem:[%s945_s6 + $0x38] sm:$0xff] %v755_v62  }
 0x10d   : > { %549 = vst [vmem:[%s936_s30 + $0x38] sm:$0xff] %v419_v63  ;;  %557 = vst [vmem:[%s936_s30 + $0x78] sm:$0xff] %v459_v0 }
 0x10e PF: > { %s14_s12 = sadd.s32 1, %s827_s12  }
 0x10f   : > { %p11_p4 = scmp.ge.s32.totalorder %s14_s12, 4  }
 0x111   :  { %13 = sbr.rel (!%p11_p4) target bundleno = 1 (0x1), region = 70 }

// kernel: fwd.5
= control target key start
LH: loop header
LB: loop body
LE: loop exit
PB: predicated region body
PF: predicated region fallthrough
CT: control target
= control target key end

     0   :  { %s2511_s0 = inlined_call_operand.vmem [shape: s32[2,2], index: 0, kind: input, shape index: {}]   ;;  %s2512_s2 = inlined_call_operand.vmem [shape: f32[256,1], index: 2, kind: input, shape index: {}]   ;;  %s2513_s3 = inlined_call_operand.vmem [shape: f32[256,1], index: 3, kind: input, shape index: {}]   ;;  %s2514_s4 = inlined_call_operand.vmem [shape: f32[1,256], index: 4, kind: input, shape index: {}]   ;;  %s2515_s5 = inlined_call_operand.vmem [shape: bf16[256,128], index: 5, kind: input, shape index: {}]   ;;  %s2516_s6 = inlined_call_operand.vmem [shape: s8[256,256], index: 6, kind: input, shape index: {}]   ;;  %s2517_s7 = inlined_call_operand.vmem [shape: f32[1,128], index: 7, kind: input, shape index: {}]   ;;  %s2518_s8 = inlined_call_operand.vmem [shape: bf16[256,128], index: 8, kind: output, shape index: {}]   ;;  %s2519_s1 = inlined_call_operand.vmem [shape: s32[2], index: 1, kind: input, shape index: {}]  }
   0x1   :  { %2523 = sst [smem:[#allocation11_spill]] %s2516_s6  ;;  %s13_s29 = sshll.u32 %s2511_s0, 4  ;;  %s14_s29 = int_to_ptr.vmem [resolvable:$true] %s13_s29 }
   0x2   :  { %s17_s10 = sshll.u32 %s2519_s1, 4  ;;  %s1986_s11 = scalar_lea.vmem %s14_s29, 32  ;;  %s18_s10 = int_to_ptr.vmem [resolvable:$true] %s17_s10 }
   0x3   :  { %p1987_p0 = scmp.ne.s32.totalorder %s14_s29, %s1986_s11  ;;  %p1991_p1 = scmp.lt.s32.totalorder %s14_s29, %s14_s29 }
   0x4   :  { %p1992_p2 = scmp.lt.s32.totalorder %s1986_s11, %s1986_s11 }
   0x6   :  { %p1993_p3 = por %p1992_p2, %p1991_p1 }
   0x8   :  { %p1994_p4 = pnand %p1993_p3, %p1987_p0 }
   0xa   :  { %1997 = shalt.err (!%p1994_p4)  }
   0xb   :  { %s2068_s12 = smov [#allocation4]   ;;  %s1998_s13 = scalar_lea.vmem %s18_s10, 16 }
   0xc   :  { %16 = dma.vmem_to_smem %s14_s29, 32, %s2068_s12, [#allocation3] }
   0xd   :  { %p1999_p5 = scmp.ne.s32.totalorder %s18_s10, %s1998_s13  ;;  %p2003_p6 = scmp.lt.s32.totalorder %s18_s10, %s18_s10 }
   0xe   :  { %p2004_p7 = scmp.lt.s32.totalorder %s1998_s13, %s1998_s13 }
  0x10   :  { %p2005_p8 = por %p2004_p7, %p2003_p6 }
  0x12   :  { %p2006_p9 = pnand %p2005_p8, %p1999_p5 }
  0x14   :  { %2009 = shalt.err (!%p2006_p9)  }
  0x15   :  { %s2069_s0 = smov [#allocation5]  }
  0x16   :  { %20 = dma.vmem_to_smem %s18_s10, 16, %s2069_s0, [#allocation3] }
  0x17   :  { %2038 = dma.done.wait [#allocation3], 48 }
  0x18   :  { %2039 = vsyncadd [#allocation3], 4294967248 }
  0x19   :  { %22 = sfence }
  0x1a   :  { %s2124_s1 = smov 0   ;;  %s2126_s14 = smov 0  }
  0x1b   :  { %s2128_s15 = smov 0   ;;  %s2130_s16 = smov 0  }
  0x1c   :  { %s2132_s17 = smov 0   ;;  %s2134_s18 = smov 0  }
  0x1d   :  { %s2136_s19 = smov 0  }
  0x1e LB: > { %2524 = sst [smem:[#allocation8_spill]] %s2062_s18  ;;  %s37_s20 = sadd.s32 1, %s2058_s17  ;;  %s2066_s19 = sphi %s2136_s19, %s28_s19   ;;  %s2062_s18 = sphi %s2134_s18, %s2530_s18   ;;  %s2058_s17 = sphi %s2132_s17, %s2534_s17   ;;  %s2054_s16 = sphi %s2130_s16, %s2528_s16   ;;  %s2050_s15 = sphi %s2128_s15, %s2533_s15   ;;  %s2046_s14 = sphi %s2126_s14, %s2532_s14   ;;  %s2042_s1 = sphi %s2124_s1, %s2531_s1  }
  0x1f   : > { %s40_s21 = sadd.s32 1, %s2062_s18  ;;  %p38_p10 = scmp.ge.s32.totalorder %s37_s20, 2 }
  0x20   : > { %s180_s22 = sshra.s32 %s2058_s17, 7  ;;  %s185_s24 = sand.u32 127, %s2058_s17 }
  0x21   : > { %s182_s23 = sadd.s32 %s2062_s18, %s180_s22  ;;  %s2536_s20 = smov (%p38_p10, %s37_s20), 0 }
  0x22   : > { %2525 = sst [smem:[#allocation9_spill]] %s2536_s20  ;;  %s2538_s21 = smov (!%p38_p10, %s40_s21), %s2062_s18 }
  0x23   : > { %s1621_s25 = sshll.u32 %s182_s23, 7  ;;  %p42_p11 = scmp.ge.s32.totalorder %s2538_s21, 2 }
  0x24   : > { %s186_s26 = sadd.s32 %s1621_s25, %s185_s24  ;;  %s188_s27 = sshra.s32 %s2536_s20, 7 }
  0x25   : > { %s2540_s21 = smov (%p42_p11, %s2538_s21), 0  ;;  %s193_s28 = sand.u32 127, %s2536_s20 }
  0x26   : > { %2526 = sst [smem:[#allocation10_spill]] %s2540_s21  ;;  %p208_p12 = scmp.ne.s32.totalorder %s2046_s14, %s2042_s1 }
  0x27   : > { %s187_s29 = sld [smem:[#allocation4 + %s186_s26]]  ;;  %s190_s30 = sadd.s32 %s188_s27, %s2540_s21 }
  0x28   : > { %s1622_s9 = sshll.u32 %s190_s30, 7  ;;  %p209_p13 = scmp.eq.s32.totalorder %s2066_s19, 0 }
  0x29   : > { %s194_s10 = sadd.s32 %s1622_s9, %s193_s28  ;;  %s196_s12 = ssub.s32 %s2062_s18, %s2540_s21 }
  0x2a   : > { %s195_s11 = sld [smem:[#allocation4 + %s194_s10]]  ;;  %p210_p0 = por %p209_p13, %p208_p12 }
  0x2b   : > { %s201_s22 = sadd.s32 1, %s2046_s14  ;;  %p1624_p2 = scmp.ge.s32.totalorder %s2066_s19, 4 }
  0x30   : > { %s197_s13 = ssub.s32 %s187_s29, %s195_s11  ;;  %284 = sbr.rel (%p1624_p2) target bundleno = 65 (0x41), region = 20 }
  0x31   : > { %s198_s0 = sor.u32 %s197_s13, %s196_s12 }
  0x32   : > { %p199_p1 = scmp.eq.s32.totalorder %s198_s0, 0 }
  0x34   : > { %s2179_s23 = scalar_select %p199_p1, %s2046_s14, %s201_s22  }
  0x35   : > { %352 = sbr.rel (!%p210_p0) target bundleno = 65 (0x41), region = 40  ;;  %s364_s24 = sld [smem:[#allocation4 + %s186_s26]] (%p210_p0) }
  0x36   : > { %s354_s25 = sand.u32 (%p210_p0), 1, %s2046_s14   ;;  %s1689_s27 = sshll.u32 (%p210_p0), %s2062_s18, 3 }
  0x37   : > { %s1625_s30 = sshll.u32 (%p210_p0), %s354_s25, 5  ;;  %s2527_s6 = sld [smem:[#allocation11_spill]] (%p210_p0) }
  0x38   : > { %s356_s11 = scalar_lea.vmem (%p210_p0), [#allocation6], %s1625_s30 }
  0x3b   : > { %s367_s28 = sadd.s32 %s1689_s27, %s364_s24 }
  0x3c   : > { %s1629_s9 = sshll.u32 %s367_s28, 3 }
  0x3d   : > { %s369_s29 = scalar_lea.vmem %s2527_s6, %s1629_s9 }
  0x3e   : > { %v404_v0 = vld [vmem:[%s369_s29] sm:$0xff]  ;;  %v406_v1 = vld [vmem:[%s369_s29 + $0x10] sm:$0xff] }
  0x3f   : > { %v408_v2 = vld [vmem:[%s369_s29 + $0x20] sm:$0xff]  ;;  %405 = vst [vmem:[%s356_s11] sm:$0xff] %v404_v0  ;;  %407 = vst [vmem:[%s356_s11 + $0x8] sm:$0xff] %v406_v1  ;;  %v410_v3 = vld [vmem:[%s369_s29 + $0x30] sm:$0xff] }
  0x40   : > { %409 = vst [vmem:[%s356_s11 + $0x10] sm:$0xff] %v408_v2  ;;  %411 = vst [vmem:[%s356_s11 + $0x18] sm:$0xff] %v410_v3 }
  0x41 PF: > { %p1630_p3 = scmp.ge.s32.totalorder %s2066_s19, 1  ;;  %p416_p4 = scmp.lt.s32.totalorder %s2066_s19, 5 }
  0x43   : > { %p417_p5 = pnand %p1630_p3, %p416_p4 }
  0x44   : > { %s423_s21 = sand.u32 (!%p417_p5), 1, %s2042_s1   ;;  %s1632_s26 = sshll.u32 (!%p417_p5), %s2054_s16, 4 }
  0x45   : > { %420 = sbr.rel (%p417_p5) target bundleno = 730 (0x2da), region = 78  ;;  %s1631_s12 = sshll.u32 (!%p417_p5), %s423_s21, 5 }
  0x46   : > { %p487_p6 = scmp.lt.s32.totalorder (!%p417_p5), %s1632_s26, 31  ;;  %s498_s13 = sshra.s32 (!%p417_p5), %s2050_s15, 7 }
  0x47   : > { %s500_s0 = sadd.s32 (!%p417_p5), %s2054_s16, %s498_s13  ;;  %s503_s22 = sand.u32 (!%p417_p5), 127, %s2050_s15 }
  0x48   : > { %s1636_s25 = sshll.u32 (!%p417_p5), %s500_s0, 7  ;;  %s2220_s6 = scalar_lea.vmem (!%p417_p5), [#allocation6], %s1631_s12 }
  0x49   : > { %s504_s1 = sadd.s32 (!%p417_p5), %s1636_s25, %s503_s22  ;;  %p1642_p9 = scmp.ne.s32.totalorder (!%p417_p5), %s2050_s15, 0 }
  0x4a   : > { %s2542_s26 = smov (!%p487_p6, %s1632_s26), 31  ;;  %s505_s21 = sld [smem:[#allocation4 + %s504_s1]] }
  0x4b   : > { %s1633_s24 = sshll.u32 %s2542_s26, 3  ;;  %s1641_s11 = sshll.u32 %s2542_s26, 2 }
  0x4c   : > { %s2197_s28 = scalar_lea.vmem %s2512_s2, %s1633_s24  ;;  %s2202_s29 = scalar_lea.vmem %s2513_s3, %s1633_s24 }
  0x4d   : > { %s2207_s13 = scalar_lea.vmem %s2518_s8, %s1641_s11  ;;  %s524_s18 = sld [smem:[#allocation4 + %s504_s1]] }
  0x50   : > { %p506_p7 = scmp.lt.s32.totalorder %s505_s21, 1 }
  0x52   : > { %s2544_s21 = smov (!%p506_p7, %s505_s21), 1 }
  0x53   : > { %s1638_s0 = sshll.u32 %s524_s18, 4  ;;  %s508_s24 = scalar_lea.vmem %s2514_s4, %s2544_s21 }
  0x54   : > { %p526_p8 = scmp.lt.s32.totalorder %s1638_s0, 31  ;;  %558 = sbr.rel (%p1642_p9) target bundleno = 98 (0x62), region = 86 }
  0x56   : > { %s2546_s0 = smov (!%p526_p8, %s1638_s0), 31 }
  0x57   : > { %s1639_s22 = sshll.u32 %s2546_s0, 2 }
  0x58   : > { %s2218_s9 = scalar_lea.vmem %s2515_s5, %s1639_s22 }
  0x59   : > { %v2070_v4 = vmov 0.0  }
  0x5a   : > { %559 = vst [vmem:[#allocation2 + $0x30] sm:$0xff] %v2070_v4  ;;  %560 = vst [vmem:[#allocation2] sm:$0xff] %v2070_v4 }
  0x5b   : > { %561 = vst [vmem:[#allocation2 + $0x58] sm:$0xff] %v2070_v4  ;;  %562 = vst [vmem:[#allocation2 + $0x18] sm:$0xff] %v2070_v4 }
  0x5c   : > { %563 = vst [vmem:[#allocation2 + $0x50] sm:$0xff] %v2070_v4  ;;  %564 = vst [vmem:[#allocation2 + $0x68] sm:$0xff] %v2070_v4 }
  0x5d   : > { %565 = vst [vmem:[#allocation2 + $0x8] sm:$0xff] %v2070_v4  ;;  %566 = vst [vmem:[#allocation2 + $0x48] sm:$0xff] %v2070_v4 }
  0x5e   : > { %567 = vst [vmem:[#allocation2 + $0x40] sm:$0xff] %v2070_v4  ;;  %568 = vst [vmem:[#allocation2 + $0x20] sm:$0xff] %v2070_v4 }
  0x5f   : > { %569 = vst [vmem:[#allocation2 + $0x10] sm:$0xff] %v2070_v4  ;;  %570 = vst [vmem:[#allocation2 + $0x38] sm:$0xff] %v2070_v4 }
  0x60   : > { %571 = vst [vmem:[#allocation2 + $0x60] sm:$0xff] %v2070_v4  ;;  %572 = vst [vmem:[#allocation2 + $0x70] sm:$0xff] %v2070_v4 }
  0x61   : > { %573 = vst [vmem:[#allocation2 + $0x78] sm:$0xff] %v2070_v4  ;;  %574 = vst [vmem:[#allocation2 + $0x28] sm:$0xff] %v2070_v4 }
  0x62 PF: > { %s575_s18 = sld [smem:[#allocation5 + %s2054_s16]] }
  0x68   : > { %p1643_p10 = scmp.ge.s32.totalorder %s2050_s15, %s575_s18 }
  0x6a   : > { %579 = sbr.rel (%p1643_p10) target bundleno = 524 (0x20c), region = 90 }
  0x6f   : > { %v588_v5 = vld [vmem:[%s2197_s28 + $0x40] sm:$0xff]  ;;  %v2071_v7 = vmov 0   ;;  %v589_v8 = vld [vmem:[%s2197_s28 + $0x48] sm:$0xff]  ;;  %v583_v10 = vld [vmem:[%s2197_s28 + $0x18] sm:$0xff] }
  0x70   : > { %v580_v6 = vld [vmem:[%s2197_s28] sm:$0xff]  ;;  %1879 = vset.pattern.permute.xlu1 %v2071_v7  ;;  %1878 = vset.pattern.permute.xlu0 %v2071_v7  ;;  %v581_v9 = vld [vmem:[%s2197_s28 + $0x8] sm:$0xff]  ;;  %v582_v11 = vld [vmem:[%s2197_s28 + $0x10] sm:$0xff] }
  0x71   : > { %639 = vperm.xlu1 %1879, %v588_v5   ;;  %599 = vperm.xlu0 %1878, %v580_v6   ;;  %v591_v12 = vld [vmem:[%s2197_s28 + $0x58] sm:$0xff]  ;;  %v590_v13 = vld [vmem:[%s2197_s28 + $0x50] sm:$0xff]  ;;  %v748_v14 = vld [vmem:[%s2202_s29 + $0x8] sm:$0xff] }
  0x72   : > { %v747_v15 = vld [vmem:[%s2202_s29] sm:$0xff]  ;;  %v1880_v16 = vld [vmem:[%s2218_s9 + $0x38] sm:$0xff]   ;;  %v1881_v17 = vld [vmem:[%s2218_s9 + $0x30] sm:$0xff]  }
  0x73   : > { %1769 = vmatprep.subr.bf16.mxu0 %v1880_v16  ;;  %1801 = vmatprep.subr.bf16.mxu1 %v1880_v16  ;;  %v756_v18 = vld [vmem:[%s2202_s29 + $0x48] sm:$0xff]  ;;  %v755_v19 = vld [vmem:[%s2202_s29 + $0x40] sm:$0xff]  ;;  %v750_v21 = vld [vmem:[%s2202_s29 + $0x18] sm:$0xff] }
  0x74   : > { %1770 = vmatpush3.bf16.msra.mxu0 %v1880_v16  ;;  %1809 = vmatpush3.bf16.msra.mxu1 %v1880_v16  ;;  %v1882_v20 = vld [vmem:[%s2218_s9 + $0x28] sm:$0xff]   ;;  %v749_v22 = vld [vmem:[%s2202_s29 + $0x10] sm:$0xff]  ;;  %v1883_v23 = vld [vmem:[%s2218_s9 + $0x20] sm:$0xff]  }
  0x75   : > { %644 = vperm.xlu1 %1879, %v589_v8   ;;  %604 = vperm.xlu0 %1878, %v581_v9   ;;  %v758_v24 = vld [vmem:[%s2202_s29 + $0x58] sm:$0xff]  ;;  %v757_v25 = vld [vmem:[%s2202_s29 + $0x50] sm:$0xff]  ;;  %v585_v27 = vld [vmem:[%s2197_s28 + $0x28] sm:$0xff] }
  0x76   : > { %1771 = vmatprep.subr.bf16.mxu0 %v1881_v17  ;;  %1802 = vmatprep.subr.bf16.mxu1 %v1881_v17  ;;  %v1884_v26 = vld [vmem:[%s2218_s9 + $0x18] sm:$0xff]   ;;  %v584_v28 = vld [vmem:[%s2197_s28 + $0x20] sm:$0xff]  ;;  %v1885_v29 = vld [vmem:[%s2218_s9 + $0x10] sm:$0xff]  }
  0x77   : > { %v593_v30 = vld [vmem:[%s2197_s28 + $0x68] sm:$0xff]  ;;  %v592_v31 = vld [vmem:[%s2197_s28 + $0x60] sm:$0xff]  ;;  %v587_v33 = vld [vmem:[%s2197_s28 + $0x38] sm:$0xff] }
  0x78   : > { %1772 = vmatpush3.bf16.msra.mxu0 %v1881_v17  ;;  %1810 = vmatpush3.bf16.msra.mxu1 %v1881_v17  ;;  %v1886_v32 = vld [vmem:[%s2218_s9 + $0x8] sm:$0xff]   ;;  %v586_v34 = vld [vmem:[%s2197_s28 + $0x30] sm:$0xff]  ;;  %v1887_v35 = vld [vmem:[%s2218_s9] sm:$0xff]  }
  0x79   : > { %614 = vperm.xlu1 %1879, %v583_v10   ;;  %609 = vperm.xlu0 %1878, %v582_v11   ;;  %v595_v36 = vld [vmem:[%s2197_s28 + $0x78] sm:$0xff]  ;;  %v594_v37 = vld [vmem:[%s2197_s28 + $0x70] sm:$0xff]  ;;  %v752_v38 = vld [vmem:[%s2202_s29 + $0x28] sm:$0xff] }
  0x7a   : > { %1773 = vmatprep.subr.bf16.mxu0 %v1882_v20  ;;  %1803 = vmatprep.subr.bf16.mxu1 %v1882_v20  ;;  %v751_v39 = vld [vmem:[%s2202_s29 + $0x20] sm:$0xff]  ;;  %v760_v40 = vld [vmem:[%s2202_s29 + $0x68] sm:$0xff]  ;;  %v754_v42 = vld [vmem:[%s2202_s29 + $0x38] sm:$0xff] }
  0x7b   : > { %v759_v41 = vld [vmem:[%s2202_s29 + $0x60] sm:$0xff]  ;;  %v753_v43 = vld [vmem:[%s2202_s29 + $0x30] sm:$0xff]  ;;  %v762_v44 = vld [vmem:[%s2202_s29 + $0x78] sm:$0xff] }
  0x7c   : > { %1774 = vmatpush3.bf16.msra.mxu0 %v1882_v20  ;;  %1811 = vmatpush3.bf16.msra.mxu1 %v1882_v20  ;;  %v761_v45 = vld [vmem:[%s2202_s29 + $0x70] sm:$0xff]  ;;  %v2270_v50 = vld [vmem:[%s508_s24] ss:$0 sm:$0xff] }
  0x7d   : > { %654 = vperm.xlu1 %1879, %v591_v12   ;;  %649 = vperm.xlu0 %1878, %v590_v13  }
  0x7e   : > { %1775 = vmatprep.subr.bf16.mxu0 %v1883_v23  ;;  %1804 = vmatprep.subr.bf16.mxu1 %v1883_v23 }
  0x80   : > { %1776 = vmatpush3.bf16.msra.mxu0 %v1883_v23  ;;  %1812 = vmatpush3.bf16.msra.mxu1 %v1883_v23 }
  0x81   : > { %770 = vperm.xlu1 %1879, %v748_v14   ;;  %765 = vperm.xlu0 %1878, %v747_v15  }
  0x82   : > { %1777 = vmatprep.subr.bf16.mxu0 %v1884_v26  ;;  %1805 = vmatprep.subr.bf16.mxu1 %v1884_v26 }
  0x84   : > { %1778 = vmatpush3.bf16.msra.mxu0 %v1884_v26  ;;  %1813 = vmatpush3.bf16.msra.mxu1 %v1884_v26 }
  0x85   : > { %810 = vperm.xlu1 %1879, %v756_v18   ;;  %805 = vperm.xlu0 %1878, %v755_v19  }
  0x86   : > { %1779 = vmatprep.subr.bf16.mxu0 %v1885_v29  ;;  %1806 = vmatprep.subr.bf16.mxu1 %v1885_v29 }
  0x88   : > { %1780 = vmatpush3.bf16.msra.mxu0 %v1885_v29  ;;  %1814 = vmatpush3.bf16.msra.mxu1 %v1885_v29 }
  0x89   : > { %780 = vperm.xlu1 %1879, %v750_v21   ;;  %775 = vperm.xlu0 %1878, %v749_v22  }
  0x8a   : > { %1781 = vmatprep.subr.bf16.mxu0 %v1886_v32  ;;  %1807 = vmatprep.subr.bf16.mxu1 %v1886_v32 }
  0x8c   : > { %1782 = vmatpush3.bf16.msra.mxu0 %v1886_v32  ;;  %1815 = vmatpush3.bf16.msra.mxu1 %v1886_v32 }
  0x8d   : > { %820 = vperm.xlu1 %1879, %v758_v24   ;;  %815 = vperm.xlu0 %1878, %v757_v25  }
  0x8e   : > { %1783 = vmatprep.subr.bf16.mxu0 %v1887_v35  ;;  %1808 = vmatprep.subr.bf16.mxu1 %v1887_v35 }
  0x90   : > { %1784 = vmatpush3.bf16.msra.mxu0 %v1887_v35  ;;  %1816 = vmatpush3.bf16.msra.mxu1 %v1887_v35 }
  0x91   : > { %624 = vperm.xlu1 %1879, %v585_v27   ;;  %619 = vperm.xlu0 %1878, %v584_v28  }
  0x95   : > { %664 = vperm.xlu1 %1879, %v593_v30   ;;  %659 = vperm.xlu0 %1878, %v592_v31  }
  0x99   : > { %634 = vperm.xlu1 %1879, %v587_v33   ;;  %629 = vperm.xlu0 %1878, %v586_v34  }
  0x9d   : > { %674 = vperm.xlu1 %1879, %v595_v36   ;;  %669 = vperm.xlu0 %1878, %v594_v37  }
  0xa1   : > { %790 = vperm.xlu1 %1879, %v752_v38   ;;  %785 = vperm.xlu0 %1878, %v751_v39  }
  0xa5   : > { %830 = vperm.xlu1 %1879, %v760_v40   ;;  %825 = vperm.xlu0 %1878, %v759_v41  }
  0xa9   : > { %800 = vperm.xlu1 %1879, %v754_v42   ;;  %795 = vperm.xlu0 %1878, %v753_v43  }
  0xad   : > { %840 = vperm.xlu1 %1879, %v762_v44   ;;  %835 = vperm.xlu0 %1878, %v761_v45  }
  0xec   : > { %v640_v46 = vpop.permute.xlu1 %639  ;;  %v600_v47 = vpop.permute.xlu0 %599 }
  0xed   : > { %v683_v51 = vadd.f32 %v2270_v50, %v600_v47  ;;  %v691_v55 = vadd.f32 %v2270_v50, %v640_v46 }
  0xef   : > { %v715_v56 = vmul.f32 0.2, %v683_v51  ;;  %vm699_vm1 = vcmp.gt.f32.partialorder %v683_v51, 0.0  ;;  %v723_v63 = vmul.f32 0.2, %v691_v55  ;;  %vm707_vm3 = vcmp.gt.f32.partialorder %v691_v55, 0.0 }
  0xf0   : > { %v645_v48 = vpop.permute.xlu1 %644  ;;  %v605_v49 = vpop.permute.xlu0 %604 }
  0xf1   : > { %v684_v52 = vadd.f32 %v2270_v50, %v605_v49  ;;  %v692_v57 = vadd.f32 %v2270_v50, %v645_v48  ;;  %v731_v3 = vsel %vm699_vm1, %v683_v51, %v715_v56  ;;  %v739_v15 = vsel %vm707_vm3, %v691_v55, %v723_v63  ;;  %v915_v49 = vld [vmem:[%s2220_s6] sm:$0xff]  ;;  %v917_v56 = vld [vmem:[%s2220_s6 + $0x10] sm:$0xff] }
  0xf3   : > { %v716_v58 = vmul.f32 0.2, %v684_v52  ;;  %vm700_vm0 = vcmp.gt.f32.partialorder %v684_v52, 0.0  ;;  %v724_v0 = vmul.f32 0.2, %v692_v57  ;;  %vm708_vm2 = vcmp.gt.f32.partialorder %v692_v57, 0.0 }
  0xf4   : > { %v615_v53 = vpop.permute.xlu1 %614  ;;  %v610_v54 = vpop.permute.xlu0 %609 }
  0xf5   : > { %v686_v61 = vadd.f32 %v2270_v50, %v615_v53  ;;  %v685_v62 = vadd.f32 %v2270_v50, %v610_v54  ;;  %v732_v2 = vsel %vm700_vm0, %v684_v52, %v716_v58  ;;  %v740_v13 = vsel %vm708_vm2, %v692_v57, %v724_v0 }
  0xf6   : > { %v919_v54 = vunpack.c.l.s8.bf16 %v915_v49  ;;  %v923_v0 = vunpack.c.l.s8.bf16 %v917_v56 }
  0xf7   : > { %v718_v7 = vmul.f32 0.2, %v686_v61  ;;  %v717_v8 = vmul.f32 0.2, %v685_v62  ;;  %vm702_vm4 = vcmp.gt.f32.partialorder %v686_v61, 0.0  ;;  %vm701_vm5 = vcmp.gt.f32.partialorder %v685_v62, 0.0 }
  0xf8   : > { %v655_v59 = vpop.permute.xlu1 %654  ;;  %v650_v60 = vpop.permute.xlu0 %649 }
  0xf9   : > { %v694_v9 = vadd.f32 %v2270_v50, %v655_v59  ;;  %v693_v12 = vadd.f32 %v2270_v50, %v650_v60  ;;  %v734_v21 = vsel %vm702_vm4, %v686_v61, %v718_v7  ;;  %v733_v22 = vsel %vm701_vm5, %v685_v62, %v717_v8 }
  0xfb   : > { %v726_v23 = vmul.f32 0.2, %v694_v9  ;;  %v725_v26 = vmul.f32 0.2, %v693_v12  ;;  %vm710_vm6 = vcmp.gt.f32.partialorder %v694_v9, 0.0  ;;  %vm709_vm7 = vcmp.gt.f32.partialorder %v693_v12, 0.0 }
  0xfc   : > { %v771_v1 = vpop.permute.xlu1 %770  ;;  %v766_v4 = vpop.permute.xlu0 %765 }
  0xfd   : > { %v844_v5 = vsub.f32 %v732_v2, %v771_v1  ;;  %v843_v6 = vsub.f32 %v731_v3, %v766_v4  ;;  %v742_v35 = vsel %vm710_vm6, %v694_v9, %v726_v23  ;;  %v741_v37 = vsel %vm709_vm7, %v693_v12, %v725_v26 }
  0xff   : > { %v860_v10 = vmin.f32 %v844_v5, 0.0  ;;  %v859_v11 = vmin.f32 %v843_v6, 0.0  ;;  %v920_v5 = vunpack.c.h.s8.bf16 %v915_v49 }
 0x100   : > { %v811_v14 = vpop.permute.xlu1 %810  ;;  %v806_v16 = vpop.permute.xlu0 %805 }
 0x101   : > { %v877_v17 = vmul.f32 1.442695, %v860_v10  ;;  %v875_v18 = vmul.f32 1.442695, %v859_v11  ;;  %v852_v19 = vsub.f32 %v740_v13, %v811_v14  ;;  %v851_v20 = vsub.f32 %v739_v15, %v806_v16 }
 0x102   : > { %v924_v16 = vunpack.c.h.s8.bf16 %v917_v56 }
 0x103   : > { %1888 = vpow2.f32 %v877_v17  ;;  %v868_v24 = vmin.f32 %v852_v19, 0.0  ;;  %v867_v25 = vmin.f32 %v851_v20, 0.0 }
 0x104   : > { %1890 = vpow2.f32 %v875_v18  ;;  %v781_v27 = vpop.permute.xlu1 %780  ;;  %v776_v28 = vpop.permute.xlu0 %775 }
 0x105   : > { %v893_v29 = vmul.f32 1.442695, %v868_v24  ;;  %v891_v30 = vmul.f32 1.442695, %v867_v25  ;;  %v846_v31 = vsub.f32 %v734_v21, %v781_v27  ;;  %v845_v32 = vsub.f32 %v733_v22, %v776_v28 }
 0x107   : > { %1892 = vpow2.f32 %v893_v29  ;;  %v862_v33 = vmin.f32 %v846_v31, 0.0  ;;  %v861_v34 = vmin.f32 %v845_v32, 0.0 }
 0x108   : > { %1894 = vpow2.f32 %v891_v30  ;;  %v821_v36 = vpop.permute.xlu1 %820  ;;  %v816_v38 = vpop.permute.xlu0 %815 }
 0x109   : > { %v881_v39 = vmul.f32 1.442695, %v862_v33  ;;  %v879_v40 = vmul.f32 1.442695, %v861_v34  ;;  %v854_v41 = vsub.f32 %v742_v35, %v821_v36  ;;  %v853_v42 = vsub.f32 %v741_v37, %v816_v38 }
 0x10b   : > { %1896 = vpow2.f32 %v881_v39  ;;  %v870_v43 = vmin.f32 %v854_v41, 0.0  ;;  %v869_v44 = vmin.f32 %v853_v42, 0.0 }
 0x10c   : > { %1898 = vpow2.f32 %v879_v40  ;;  %v625_v45 = vpop.permute.xlu1 %624  ;;  %v620_v46 = vpop.permute.xlu0 %619 }
 0x10d   : > { %v897_v47 = vmul.f32 1.442695, %v870_v43  ;;  %v895_v48 = vmul.f32 1.442695, %v869_v44  ;;  %v688_v58 = vadd.f32 %v2270_v50, %v625_v45  ;;  %v687_v59 = vadd.f32 %v2270_v50, %v620_v46 }
 0x10f   : > { %1900 = vpow2.f32 %v897_v47  ;;  %v720_v3 = vmul.f32 0.2, %v688_v58  ;;  %v719_v4 = vmul.f32 0.2, %v687_v59  ;;  %vm704_vm8 = vcmp.gt.f32.partialorder %v688_v58, 0.0 }
 0x110   : > { %v1889_v51 = vpop.eup %1888  ;;  %1902 = vpow2.f32 %v895_v48  ;;  %v665_v52 = vpop.permute.xlu1 %664  ;;  %vm703_vm9 = vcmp.gt.f32.partialorder %v687_v59, 0.0 }
 0x111   : > { %v660_v53 = vpop.permute.xlu0 %659  ;;  %v1891_v55 = vpop.eup %1890  ;;  %v696_v7 = vadd.f32 %v2270_v50, %v665_v52  ;;  %v736_v17 = vsel %vm704_vm8, %v688_v58, %v720_v3  ;;  %v735_v22 = vsel %vm703_vm9, %v687_v59, %v719_v4 }
 0x112   : > { %v907_v57 = vpack.c.bf16 %v1889_v51, %v1891_v55  ;;  %v695_v8 = vadd.f32 %v2270_v50, %v660_v53 }
 0x113   : > { %v728_v19 = vmul.f32 0.2, %v696_v7  ;;  %vm712_vm10 = vcmp.gt.f32.partialorder %v696_v7, 0.0 }
 0x114   : > { %v1893_v60 = vpop.eup %1892  ;;  %v635_v61 = vpop.permute.xlu1 %634  ;;  %v927_v63 = vmul.bf16 %v919_v54, %v907_v57  ;;  %v727_v20 = vmul.f32 0.2, %v695_v8  ;;  %vm711_vm11 = vcmp.gt.f32.partialorder %v695_v8, 0.0 }
 0x115   : > { %v630_v62 = vpop.permute.xlu0 %629  ;;  %v1895_v1 = vpop.eup %1894  ;;  %v690_v13 = vadd.f32 %v2270_v50, %v635_v61  ;;  %v744_v35 = vsel %vm712_vm10, %v696_v7, %v728_v19 }
 0x116   : > { %1785 = vmatprep.mubr.bf16.mxu0 %v927_v63  ;;  %v911_v2 = vpack.c.bf16 %v1893_v60, %v1895_v1  ;;  %v689_v14 = vadd.f32 %v2270_v50, %v630_v62  ;;  %v743_v37 = vsel %vm711_vm11, %v695_v8, %v727_v20 }
 0x117   : > { %v722_v28 = vmul.f32 0.2, %v690_v13  ;;  %vm706_vm12 = vcmp.gt.f32.partialorder %v690_v13, 0.0 }
 0x118   : > { %v1897_v6 = vpop.eup %1896  ;;  %v675_v9 = vpop.permute.xlu1 %674  ;;  %v931_v11 = vmul.bf16 %v923_v0, %v911_v2  ;;  %v721_v29 = vmul.f32 0.2, %v689_v14  ;;  %vm705_vm13 = vcmp.gt.f32.partialorder %v689_v14, 0.0 }
 0x119   : > { %v670_v10 = vpop.permute.xlu0 %669  ;;  %v1899_v12 = vpop.eup %1898  ;;  %v698_v31 = vadd.f32 %v2270_v50, %v675_v9  ;;  %v738_v44 = vsel %vm706_vm12, %v690_v13, %v722_v28  ;;  %v937_v28 = vld [vmem:[#allocation2 + $0x58] sm:$0xff] }
 0x11a   : > { %1793 = vmatprep.mubr.bf16.mxu1 %v931_v11  ;;  %v908_v15 = vpack.c.bf16 %v1897_v6, %v1899_v12  ;;  %v697_v34 = vadd.f32 %v2270_v50, %v670_v10  ;;  %v737_v45 = vsel %vm705_vm13, %v689_v14, %v721_v29  ;;  %v916_v6 = vld [vmem:[%s2220_s6 + $0x8] sm:$0xff]  ;;  %v918_v10 = vld [vmem:[%s2220_s6 + $0x18] sm:$0xff] }
 0x11b   : > { %v730_v46 = vmul.f32 0.2, %v698_v31  ;;  %vm714_vm14 = vcmp.gt.f32.partialorder %v698_v31, 0.0  ;;  %v921_v8 = vunpack.c.l.s8.bf16 %v916_v6  ;;  %v925_v14 = vunpack.c.l.s8.bf16 %v918_v10 }
 0x11c   : > { %v1901_v18 = vpop.eup %1900  ;;  %v791_v21 = vpop.permute.xlu1 %790  ;;  %v928_v24 = vmul.bf16 %v920_v5, %v908_v15  ;;  %v729_v49 = vmul.f32 0.2, %v697_v34  ;;  %vm713_vm15 = vcmp.gt.f32.partialorder %v697_v34, 0.0  ;;  %v922_v19 = vunpack.c.h.s8.bf16 %v916_v6 }
 0x11d   : > { %v786_v23 = vpop.permute.xlu0 %785  ;;  %v1903_v25 = vpop.eup %1902  ;;  %v848_v26 = vsub.f32 %v736_v17, %v791_v21  ;;  %v746_v58 = vsel %vm714_vm14, %v698_v31, %v730_v46 }
 0x11e   : > { %v847_v27 = vsub.f32 %v735_v22, %v786_v23  ;;  %1786 = vmatmul.mubr.bf16.vlgmr.msra.gmra.mxu0 %v928_v24  ;;  %v912_v30 = vpack.c.bf16 %v1901_v18, %v1903_v25  ;;  %v745_v60 = vsel %vm713_vm15, %v697_v34, %v729_v49  ;;  %v926_v24 = vunpack.c.h.s8.bf16 %v918_v10  ;;  %v945_v34 = vld [vmem:[#allocation2 + $0x10] sm:$0xff] }
 0x11f   : > { %v864_v32 = vmin.f32 %v848_v26, 0.0 }
 0x120   : > { %v863_v33 = vmin.f32 %v847_v27, 0.0  ;;  %v831_v36 = vpop.permute.xlu1 %830  ;;  %v932_v39 = vmul.bf16 %v924_v16, %v912_v30  ;;  %v935_v30 = vld [vmem:[#allocation2 + $0x30] sm:$0xff] }
 0x121   : > { %v826_v38 = vpop.permute.xlu0 %825  ;;  %v885_v40 = vmul.f32 1.442695, %v864_v32  ;;  %v856_v42 = vsub.f32 %v744_v35, %v831_v36 }
 0x122   : > { %v883_v41 = vmul.f32 1.442695, %v863_v33  ;;  %v855_v43 = vsub.f32 %v743_v37, %v826_v38  ;;  %1794 = vmatmul.mubr.bf16.vlgmr.msra.gmra.mxu1 %v932_v39  ;;  %v938_v33 = vld [vmem:[#allocation2 + $0x18] sm:$0xff]  ;;  %v936_v38 = vld [vmem:[#allocation2] sm:$0xff] }
 0x123   : > { %1904 = vpow2.f32 %v885_v40  ;;  %v872_v47 = vmin.f32 %v856_v42, 0.0  ;;  %v943_v39 = vld [vmem:[#allocation2 + $0x40] sm:$0xff] }
 0x124   : > { %v871_v48 = vmin.f32 %v855_v43, 0.0  ;;  %1906 = vpow2.f32 %v883_v41  ;;  %v801_v50 = vpop.permute.xlu1 %800 }
 0x125   : > { %v796_v51 = vpop.permute.xlu0 %795  ;;  %v901_v52 = vmul.f32 1.442695, %v872_v47  ;;  %v850_v54 = vsub.f32 %v738_v44, %v801_v50  ;;  %v946_v44 = vld [vmem:[#allocation2 + $0x38] sm:$0xff] }
 0x126   : > { %v899_v53 = vmul.f32 1.442695, %v871_v48  ;;  %v849_v55 = vsub.f32 %v737_v45, %v796_v51  ;;  %v944_v48 = vld [vmem:[#allocation2 + $0x20] sm:$0xff] }
 0x127   : > { %1908 = vpow2.f32 %v901_v52  ;;  %v866_v56 = vmin.f32 %v850_v54, 0.0  ;;  %v941_v52 = vld [vmem:[#allocation2 + $0x8] sm:$0xff]  ;;  %v939_v54 = vld [vmem:[#allocation2 + $0x50] sm:$0xff] }
 0x128   : > { %v865_v57 = vmin.f32 %v849_v55, 0.0  ;;  %1910 = vpow2.f32 %v899_v53  ;;  %v841_v59 = vpop.permute.xlu1 %840 }
 0x129   : > { %v836_v61 = vpop.permute.xlu0 %835  ;;  %v889_v62 = vmul.f32 1.442695, %v866_v56  ;;  %v858_v0 = vsub.f32 %v746_v58, %v841_v59  ;;  %v949_v58 = vld [vmem:[#allocation2 + $0x78] sm:$0xff] }
 0x12a   : > { %v887_v63 = vmul.f32 1.442695, %v865_v57  ;;  %v857_v1 = vsub.f32 %v745_v60, %v836_v61  ;;  %v942_v57 = vld [vmem:[#allocation2 + $0x48] sm:$0xff] }
 0x12b   : > { %1912 = vpow2.f32 %v889_v62  ;;  %v874_v2 = vmin.f32 %v858_v0, 0.0  ;;  %v940_v62 = vld [vmem:[#allocation2 + $0x68] sm:$0xff] }
 0x12c   : > { %v873_v3 = vmin.f32 %v857_v1, 0.0  ;;  %1914 = vpow2.f32 %v887_v63  ;;  %v947_v63 = vld [vmem:[#allocation2 + $0x60] sm:$0xff] }
 0x12d   : > { %v905_v4 = vmul.f32 1.442695, %v874_v2 }
 0x12e   : > { %v903_v5 = vmul.f32 1.442695, %v873_v3 }
 0x12f   : > { %1916 = vpow2.f32 %v905_v4  ;;  %v950_v4 = vld [vmem:[#allocation2 + $0x28] sm:$0xff] }
 0x130   : > { %v1905_v7 = vpop.eup %1904  ;;  %1918 = vpow2.f32 %v903_v5 }
 0x131   : > { %v1907_v9 = vpop.eup %1906 }
 0x132   : > { %v909_v11 = vpack.c.bf16 %v1905_v7, %v1907_v9 }
 0x134   : > { %v1909_v12 = vpop.eup %1908  ;;  %v929_v13 = vmul.bf16 %v921_v8, %v909_v11  ;;  %v948_v8 = vld [vmem:[#allocation2 + $0x70] sm:$0xff] }
 0x135   : > { %v1911_v15 = vpop.eup %1910 }
 0x136   : > { %1789 = vmatprep.mubr.bf16.mxu0 %v929_v13  ;;  %v913_v16 = vpack.c.bf16 %v1909_v12, %v1911_v15 }
 0x138   : > { %v1913_v17 = vpop.eup %1912  ;;  %v933_v18 = vmul.bf16 %v925_v14, %v913_v16 }
 0x139   : > { %v1915_v20 = vpop.eup %1914 }
 0x13a   : > { %1797 = vmatprep.mubr.bf16.mxu1 %v933_v18  ;;  %v910_v21 = vpack.c.bf16 %v1913_v17, %v1915_v20 }
 0x13c   : > { %v1917_v22 = vpop.eup %1916  ;;  %v930_v23 = vmul.bf16 %v922_v19, %v910_v21 }
 0x13d   : > { %v1919_v25 = vpop.eup %1918 }
 0x13e   : > { %1790 = vmatmul.mubr.bf16.gmra.mxu0 %v930_v23  ;;  %v914_v26 = vpack.c.bf16 %v1917_v22, %v1919_v25 }
 0x140   : > { %v934_v27 = vmul.bf16 %v926_v24, %v914_v26 }
 0x142   : > { %1798 = vmatmul.mubr.bf16.gmra.mxu1 %v934_v27 }
 0x1de   : > { %v1787_v29 = vpop.f32.mrf.mxu0 }
 0x1df   : > { %v1114_v31 = vadd.f32 %v1787_v29, %v937_v28 }
 0x1e0   : > { %v1049_v32 = vpop.f32.mrf.mxu0 }
 0x1e1   : > { %1130 = vst [vmem:[#allocation2 + $0x58] sm:$0xff] %v1114_v31  ;;  %v1112_v35 = vadd.f32 %v1049_v32, %v935_v30 }
 0x1e2   : > { %v1788_v36 = vpop.f32.mrf.mxu0  ;;  %v1795_v37 = vpop.f32.mrf.mxu1 }
 0x1e3   : > { %1128 = vst [vmem:[#allocation2 + $0x30] sm:$0xff] %v1112_v35  ;;  %v1115_v40 = vadd.f32 %v1788_v36, %v938_v33  ;;  %v1122_v41 = vadd.f32 %v1795_v37, %v945_v34 }
 0x1e4   : > { %v1052_v42 = vpop.f32.mrf.mxu0  ;;  %v1081_v43 = vpop.f32.mrf.mxu1 }
 0x1e5   : > { %1131 = vst [vmem:[#allocation2 + $0x18] sm:$0xff] %v1115_v40  ;;  %1138 = vst [vmem:[#allocation2 + $0x10] sm:$0xff] %v1122_v41  ;;  %v1113_v45 = vadd.f32 %v1052_v42, %v936_v38  ;;  %v1120_v46 = vadd.f32 %v1081_v43, %v943_v39 }
 0x1e6   : > { %v1796_v47 = vpop.f32.mrf.mxu1 }
 0x1e7   : > { %1129 = vst [vmem:[#allocation2] sm:$0xff] %v1113_v45  ;;  %1136 = vst [vmem:[#allocation2 + $0x40] sm:$0xff] %v1120_v46  ;;  %v1123_v49 = vadd.f32 %v1796_v47, %v946_v44 }
 0x1e8   : > { %v1084_v50 = vpop.f32.mrf.mxu1 }
 0x1e9   : > { %1139 = vst [vmem:[#allocation2 + $0x38] sm:$0xff] %v1123_v49  ;;  %v1121_v51 = vadd.f32 %v1084_v50, %v944_v48 }
 0x1eb   : > { %1137 = vst [vmem:[#allocation2 + $0x20] sm:$0xff] %v1121_v51 }
 0x1fe   : > { %v1791_v53 = vpop.f32.mrf.mxu0 }
 0x1ff   : > { %v1118_v55 = vadd.f32 %v1791_v53, %v941_v52 }
 0x200   : > { %v1065_v56 = vpop.f32.mrf.mxu0 }
 0x201   : > { %1134 = vst [vmem:[#allocation2 + $0x8] sm:$0xff] %v1118_v55  ;;  %v1116_v59 = vadd.f32 %v1065_v56, %v939_v54 }
 0x202   : > { %v1792_v60 = vpop.f32.mrf.mxu0  ;;  %v1799_v61 = vpop.f32.mrf.mxu1 }
 0x203   : > { %1132 = vst [vmem:[#allocation2 + $0x50] sm:$0xff] %v1116_v59  ;;  %v1119_v0 = vadd.f32 %v1792_v60, %v942_v57  ;;  %v1126_v1 = vadd.f32 %v1799_v61, %v949_v58 }
 0x204   : > { %v1068_v2 = vpop.f32.mrf.mxu0  ;;  %v1097_v3 = vpop.f32.mrf.mxu1 }
 0x205   : > { %1135 = vst [vmem:[#allocation2 + $0x48] sm:$0xff] %v1119_v0  ;;  %1142 = vst [vmem:[#allocation2 + $0x78] sm:$0xff] %v1126_v1  ;;  %v1117_v5 = vadd.f32 %v1068_v2, %v940_v62  ;;  %v1124_v6 = vadd.f32 %v1097_v3, %v947_v63 }
 0x206   : > { %v1800_v7 = vpop.f32.mrf.mxu1 }
 0x207   : > { %1133 = vst [vmem:[#allocation2 + $0x68] sm:$0xff] %v1117_v5  ;;  %1140 = vst [vmem:[#allocation2 + $0x60] sm:$0xff] %v1124_v6  ;;  %v1127_v9 = vadd.f32 %v1800_v7, %v950_v4 }
 0x208   : > { %v1100_v10 = vpop.f32.mrf.mxu1 }
 0x209   : > { %1143 = vst [vmem:[#allocation2 + $0x28] sm:$0xff] %v1127_v9  ;;  %v1125_v11 = vadd.f32 %v1100_v10, %v948_v8 }
 0x20b   : > { %1141 = vst [vmem:[#allocation2 + $0x70] sm:$0xff] %v1125_v11 }
 0x20c PF: > { %p1653_p11 = scmp.ne.s32.totalorder %s2050_s15, 1 }
 0x20e   : > { %1147 = sbr.rel (%p1653_p11) target bundleno = 730 (0x2da), region = 94 }
 0x213   : > { %v2294_v12 = vld [vmem:[#allocation2 + $0x58] sm:$0xff]  ;;  %v2296_v13 = vld [vmem:[#allocation2 + $0x30] sm:$0xff]  ;;  %v2072_v15 = vmov 32   ;;  %v2303_v19 = vld [vmem:[#allocation2] sm:$0xff]  ;;  %v1315_v61 = vlaneseq }
 0x214   : > { %v2298_v14 = vld [vmem:[#allocation2 + $0x18] sm:$0xff]  ;;  %1921 = vset.pattern.permute.xlu1 %v2072_v15  ;;  %1920 = vset.pattern.permute.xlu0 %v2072_v15  ;;  %v1166_v16 = vmax.f32 %v2294_v12, 1e-20  ;;  %v1164_v17 = vmax.f32 %v2296_v13, 1e-20  ;;  %v2305_v20 = vld [vmem:[#allocation2 + $0x68] sm:$0xff] }
 0x215   : > { %v1167_v18 = vmax.f32 %v2298_v14, 1e-20  ;;  %v1165_v21 = vmax.f32 %v2303_v19, 1e-20  ;;  %v2308_v22 = vld [vmem:[#allocation2 + $0x50] sm:$0xff]  ;;  %v2312_v25 = vld [vmem:[#allocation2 + $0x48] sm:$0xff] }
 0x216   : > { %1922 = vrcp.f32 %v1166_v16  ;;  %v1169_v23 = vmax.f32 %v2305_v20, 1e-20  ;;  %v1168_v24 = vmax.f32 %v2308_v22, 1e-20  ;;  %v2314_v26 = vld [vmem:[#allocation2 + $0x8] sm:$0xff]  ;;  %v2318_v29 = vld [vmem:[#allocation2 + $0x20] sm:$0xff] }
 0x217   : > { %1924 = vrcp.f32 %v1164_v17  ;;  %v1171_v27 = vmax.f32 %v2312_v25, 1e-20  ;;  %v1170_v28 = vmax.f32 %v2314_v26, 1e-20  ;;  %v2320_v30 = vld [vmem:[#allocation2 + $0x40] sm:$0xff]  ;;  %v2324_v33 = vld [vmem:[#allocation2 + $0x38] sm:$0xff] }
 0x218   : > { %1926 = vrcp.f32 %v1167_v18  ;;  %v1173_v31 = vmax.f32 %v2318_v29, 1e-20  ;;  %v1172_v32 = vmax.f32 %v2320_v30, 1e-20  ;;  %v2326_v34 = vld [vmem:[#allocation2 + $0x10] sm:$0xff]  ;;  %v2332_v42 = vld [vmem:[#allocation2 + $0x60] sm:$0xff] }
 0x219   : > { %1928 = vrcp.f32 %v1165_v21  ;;  %v1175_v37 = vmax.f32 %v2324_v33, 1e-20  ;;  %v1174_v39 = vmax.f32 %v2326_v34, 1e-20  ;;  %v2330_v40 = vld [vmem:[#allocation2 + $0x70] sm:$0xff]  ;;  %v2336_v46 = vld [vmem:[#allocation2 + $0x28] sm:$0xff] }
 0x21a   : > { %1930 = vrcp.f32 %v1169_v23  ;;  %v1177_v43 = vmax.f32 %v2330_v40, 1e-20  ;;  %v1176_v45 = vmax.f32 %v2332_v42, 1e-20  ;;  %v2338_v48 = vld [vmem:[#allocation2 + $0x78] sm:$0xff]  ;;  %v2342_v62 = vand.u32 127, %v1315_v61 }
 0x21b   : > { %1932 = vrcp.f32 %v1168_v24  ;;  %v1179_v49 = vmax.f32 %v2336_v46, 1e-20  ;;  %v1178_v51 = vmax.f32 %v2338_v48, 1e-20  ;;  %v2347_v63 = vld [vmem:[%s2517_s7] ss:$0 sm:$0xff] }
 0x21c   : > { %1934 = vrcp.f32 %v1171_v27  ;;  %vm1317_vm0 = vcmp.eq.s32.totalorder %v2342_v62, 32 }
 0x21d   : > { %1936 = vrcp.f32 %v1170_v28 }
 0x21e   : > { %1938 = vrcp.f32 %v1173_v31 }
 0x21f   : > { %1940 = vrcp.f32 %v1172_v32 }
 0x220   : > { %1942 = vrcp.f32 %v1175_v37 }
 0x221   : > { %1944 = vrcp.f32 %v1174_v39 }
 0x222   : > { %1946 = vrcp.f32 %v1177_v43 }
 0x223   : > { %v1923_v35 = vpop.eup %1922  ;;  %1948 = vrcp.f32 %v1176_v45 }
 0x224   : > { %v1925_v36 = vpop.eup %1924  ;;  %1208 = vperm.xlu1 %1921, %v1923_v35   ;;  %1950 = vrcp.f32 %v1179_v49 }
 0x225   : > { %v1927_v38 = vpop.eup %1926  ;;  %1198 = vperm.xlu0 %1920, %v1925_v36   ;;  %1952 = vrcp.f32 %v1178_v51 }
 0x226   : > { %v1929_v41 = vpop.eup %1928 }
 0x227   : > { %v1931_v44 = vpop.eup %1930 }
 0x228   : > { %1213 = vperm.xlu1 %1921, %v1927_v38   ;;  %v1933_v47 = vpop.eup %1932 }
 0x229   : > { %1203 = vperm.xlu0 %1920, %v1929_v41   ;;  %v1935_v50 = vpop.eup %1934 }
 0x22a   : > { %v1937_v52 = vpop.eup %1936 }
 0x22b   : > { %v1939_v53 = vpop.eup %1938 }
 0x22c   : > { %1223 = vperm.xlu1 %1921, %v1931_v44   ;;  %v1941_v54 = vpop.eup %1940 }
 0x22d   : > { %1218 = vperm.xlu0 %1920, %v1933_v47   ;;  %v1943_v55 = vpop.eup %1942 }
 0x22e   : > { %v1945_v56 = vpop.eup %1944 }
 0x22f   : > { %v1947_v57 = vpop.eup %1946 }
 0x230   : > { %1233 = vperm.xlu1 %1921, %v1935_v50   ;;  %v1949_v58 = vpop.eup %1948 }
 0x231   : > { %1228 = vperm.xlu0 %1920, %v1937_v52   ;;  %v1951_v59 = vpop.eup %1950 }
 0x232   : > { %v1953_v60 = vpop.eup %1952 }
 0x234   : > { %1243 = vperm.xlu1 %1921, %v1939_v53  }
 0x235   : > { %1238 = vperm.xlu0 %1920, %v1941_v54  }
 0x238   : > { %1253 = vperm.xlu1 %1921, %v1943_v55  }
 0x239   : > { %1248 = vperm.xlu0 %1920, %v1945_v56  }
 0x23c   : > { %1263 = vperm.xlu1 %1921, %v1947_v57  }
 0x23d   : > { %1258 = vperm.xlu0 %1920, %v1949_v58  }
 0x240   : > { %1273 = vperm.xlu1 %1921, %v1951_v59  }
 0x241   : > { %1268 = vperm.xlu0 %1920, %v1953_v60  }
 0x29f   : > { %v1209_v0 = vpop.permute.xlu1 %1208 }
 0x2a0   : > { %v1278_v1 = vmul.f32 %v1209_v0, %v2294_v12  ;;  %v1199_v2 = vpop.permute.xlu0 %1198 }
 0x2a1   : > { %v1276_v3 = vmul.f32 %v1199_v2, %v2296_v13 }
 0x2a2   : > { %v1301_v4 = vadd.f32 %v2347_v63, %v1278_v1 }
 0x2a3   : > { %v1299_v5 = vadd.f32 %v2347_v63, %v1276_v3  ;;  %v1214_v6 = vpop.permute.xlu1 %1213 }
 0x2a4   : > { %v2356_v7 = vsel %vm1317_vm0, 1.0, %v1301_v4  ;;  %v1279_v8 = vmul.f32 %v1214_v6, %v2298_v14  ;;  %v1204_v9 = vpop.permute.xlu0 %1203 }
 0x2a5   : > { %v1354_v10 = vmul.f32 1.442695, %v2356_v7  ;;  %v2362_v11 = vsel %vm1317_vm0, 1.0, %v1299_v5  ;;  %v1277_v12 = vmul.f32 %v1204_v9, %v2303_v19  ;;  %vm1336_vm1 = vcmp.gt.f32.partialorder %v2356_v7, 0.0 }
 0x2a6   : > { %v1350_v13 = vmul.f32 1.442695, %v2362_v11  ;;  %v1302_v15 = vadd.f32 %v2347_v63, %v1279_v8  ;;  %vm1334_vm2 = vcmp.gt.f32.partialorder %v2362_v11, 0.0 }
 0x2a7   : > { %1954 = vpow2.f32 %v1354_v10  ;;  %v1300_v16 = vadd.f32 %v2347_v63, %v1277_v12  ;;  %v1224_v17 = vpop.permute.xlu1 %1223 }
 0x2a8   : > { %1956 = vpow2.f32 %v1350_v13  ;;  %v2370_v14 = vsel %vm1317_vm0, 1.0, %v1302_v15  ;;  %v1281_v18 = vmul.f32 %v1224_v17, %v2305_v20  ;;  %v1219_v21 = vpop.permute.xlu0 %1218 }
 0x2a9   : > { %v1356_v23 = vmul.f32 1.442695, %v2370_v14  ;;  %v2376_v19 = vsel %vm1317_vm0, 1.0, %v1300_v16  ;;  %v1280_v24 = vmul.f32 %v1219_v21, %v2308_v22  ;;  %vm1337_vm3 = vcmp.gt.f32.partialorder %v2370_v14, 0.0 }
 0x2aa   : > { %v1352_v27 = vmul.f32 1.442695, %v2376_v19  ;;  %v1304_v28 = vadd.f32 %v2347_v63, %v1281_v18  ;;  %vm1335_vm4 = vcmp.gt.f32.partialorder %v2376_v19, 0.0 }
 0x2ab   : > { %1958 = vpow2.f32 %v1356_v23  ;;  %v1303_v31 = vadd.f32 %v2347_v63, %v1280_v24  ;;  %v1234_v32 = vpop.permute.xlu1 %1233 }
 0x2ac   : > { %1960 = vpow2.f32 %v1352_v27  ;;  %v2384_v20 = vsel %vm1317_vm0, 1.0, %v1304_v28  ;;  %v1283_v35 = vmul.f32 %v1234_v32, %v2312_v25  ;;  %v1229_v36 = vpop.permute.xlu0 %1228 }
 0x2ad   : > { %v1360_v37 = vmul.f32 1.442695, %v2384_v20  ;;  %v2390_v22 = vsel %vm1317_vm0, 1.0, %v1303_v31  ;;  %v1282_v38 = vmul.f32 %v1229_v36, %v2314_v26  ;;  %vm1339_vm5 = vcmp.gt.f32.partialorder %v2384_v20, 0.0 }
 0x2ae   : > { %v1358_v39 = vmul.f32 1.442695, %v2390_v22  ;;  %v1306_v41 = vadd.f32 %v2347_v63, %v1283_v35  ;;  %vm1338_vm6 = vcmp.gt.f32.partialorder %v2390_v22, 0.0 }
 0x2af   : > { %1962 = vpow2.f32 %v1360_v37  ;;  %v1305_v43 = vadd.f32 %v2347_v63, %v1282_v38  ;;  %v1244_v44 = vpop.permute.xlu1 %1243 }
 0x2b0   : > { %1964 = vpow2.f32 %v1358_v39  ;;  %v2398_v25 = vsel %vm1317_vm0, 1.0, %v1306_v41  ;;  %v1285_v45 = vmul.f32 %v1244_v44, %v2318_v29  ;;  %v1239_v47 = vpop.permute.xlu0 %1238 }
 0x2b1   : > { %v1364_v49 = vmul.f32 1.442695, %v2398_v25  ;;  %v2404_v26 = vsel %vm1317_vm0, 1.0, %v1305_v43  ;;  %v1284_v50 = vmul.f32 %v1239_v47, %v2320_v30  ;;  %vm1341_vm7 = vcmp.gt.f32.partialorder %v2398_v25, 0.0 }
 0x2b2   : > { %v1362_v51 = vmul.f32 1.442695, %v2404_v26  ;;  %v1308_v52 = vadd.f32 %v2347_v63, %v1285_v45  ;;  %vm1340_vm8 = vcmp.gt.f32.partialorder %v2404_v26, 0.0 }
 0x2b3   : > { %1966 = vpow2.f32 %v1364_v49  ;;  %v1307_v53 = vadd.f32 %v2347_v63, %v1284_v50  ;;  %v1254_v54 = vpop.permute.xlu1 %1253 }
 0x2b4   : > { %v1955_v55 = vpop.eup %1954  ;;  %1968 = vpow2.f32 %v1362_v51  ;;  %v2412_v29 = vsel %vm1317_vm0, 1.0, %v1308_v52  ;;  %v1287_v56 = vmul.f32 %v1254_v54, %v2324_v33  ;;  %v1249_v57 = vpop.permute.xlu0 %1248 }
 0x2b5   : > { %v1957_v58 = vpop.eup %1956  ;;  %v1368_v30 = vmul.f32 1.442695, %v2412_v29  ;;  %v2418_v59 = vsel %vm1317_vm0, 1.0, %v1307_v53  ;;  %v1657_v0 = vadd.f32 -1.0, %v1955_v55  ;;  %v1286_v33 = vmul.f32 %v1249_v57, %v2326_v34 }
 0x2b6   : > { %v1366_v60 = vmul.f32 1.442695, %v2418_v59  ;;  %v1310_v61 = vadd.f32 %v2347_v63, %v1287_v56  ;;  %v1655_v3 = vadd.f32 -1.0, %v1957_v58  ;;  %vm1343_vm9 = vcmp.gt.f32.partialorder %v2412_v29, 0.0 }
 0x2b7   : > { %1970 = vpow2.f32 %v1368_v30  ;;  %v1264_v1 = vpop.permute.xlu1 %1263  ;;  %v1309_v12 = vadd.f32 %v2347_v63, %v1286_v33  ;;  %vm1342_vm10 = vcmp.gt.f32.partialorder %v2418_v59, 0.0 }
 0x2b8   : > { %v1959_v2 = vpop.eup %1958  ;;  %1972 = vpow2.f32 %v1366_v60  ;;  %v2428_v4 = vsel %vm1317_vm0, 1.0, %v1310_v61  ;;  %v1289_v5 = vmul.f32 %v1264_v1, %v2330_v40  ;;  %v1259_v6 = vpop.permute.xlu0 %1258  ;;  %v1400_v40 = vsel %vm1336_vm1, %v2356_v7, %v1657_v0 }
 0x2b9   : > { %v1961_v8 = vpop.eup %1960  ;;  %v1658_v9 = vadd.f32 -1.0, %v1959_v2  ;;  %v1372_v10 = vmul.f32 1.442695, %v2428_v4  ;;  %v1288_v15 = vmul.f32 %v1259_v6, %v2332_v42  ;;  %v2445_v17 = vsel %vm1317_vm0, 1.0, %v1309_v12 }
 0x2ba   : > { %v1656_v34 = vadd.f32 -1.0, %v1961_v8  ;;  %v1312_v13 = vadd.f32 %v2347_v63, %v1289_v5  ;;  %v1398_v21 = vsel %vm1334_vm2, %v2362_v11, %v1655_v3  ;;  %v1370_v7 = vmul.f32 1.442695, %v2445_v17 }
 0x2bb   : > { %v1401_v16 = vsel %vm1337_vm3, %v2370_v14, %v1658_v9  ;;  %1974 = vpow2.f32 %v1372_v10  ;;  %v1274_v24 = vpop.permute.xlu1 %1273  ;;  %v1311_v35 = vadd.f32 %v2347_v63, %v1288_v15  ;;  %vm1345_vm11 = vcmp.gt.f32.partialorder %v2428_v4, 0.0 }
 0x2bc   : > { %v1963_v18 = vpop.eup %1962  ;;  %v1714_v42 = vpack.c.bf16 %v1401_v16, %v1400_v40  ;;  %v1399_v23 = vsel %vm1335_vm4, %v2376_v19, %v1656_v34  ;;  %v1269_v27 = vpop.permute.xlu0 %1268  ;;  %v1331_v32 = vsel %vm1317_vm0, 1.0, %v1312_v13  ;;  %1976 = vpow2.f32 %v1370_v7 }
 0x2bd   : > { %v1965_v28 = vpop.eup %1964  ;;  %v1709_v14 = vpack.c.bf16 %v1399_v23, %v1398_v21  ;;  %v1660_v31 = vadd.f32 -1.0, %v1963_v18  ;;  %v1376_v36 = vmul.f32 1.442695, %v1331_v32  ;;  %v1330_v37 = vsel %vm1317_vm0, 1.0, %v1311_v35 }
 0x2be   : > { %1746 = vst [vmem:[%s2207_s13 + $0x8] sm:$0xff] %v1714_v42   ;;  %v1659_v11 = vadd.f32 -1.0, %v1965_v28  ;;  %v1291_v38 = vmul.f32 %v1274_v24, %v2336_v46  ;;  %v1290_v39 = vmul.f32 %v1269_v27, %v2338_v48  ;;  %v1374_v44 = vmul.f32 1.442695, %v1330_v37 }
 0x2bf   : > { %1710 = vst [vmem:[%s2207_s13] sm:$0xff] %v1709_v14   ;;  %v1403_v19 = vsel %vm1339_vm5, %v2384_v20, %v1660_v31  ;;  %1978 = vpow2.f32 %v1376_v36  ;;  %vm1344_vm12 = vcmp.gt.f32.partialorder %v2445_v17, 0.0  ;;  %vm1347_vm13 = vcmp.gt.f32.partialorder %v1331_v32, 0.0 }
 0x2c0   : > { %v1967_v41 = vpop.eup %1966  ;;  %v1402_v43 = vsel %vm1338_vm6, %v2390_v22, %v1659_v11  ;;  %v1314_v50 = vadd.f32 %v2347_v63, %v1291_v38  ;;  %v1313_v20 = vadd.f32 %v2347_v63, %v1290_v39  ;;  %1980 = vpow2.f32 %v1374_v44 }
 0x2c1   : > { %v1969_v45 = vpop.eup %1968  ;;  %v1719_v47 = vpack.c.bf16 %v1403_v19, %v1402_v43  ;;  %v1662_v49 = vadd.f32 -1.0, %v1967_v41  ;;  %vm1346_vm14 = vcmp.gt.f32.partialorder %v1330_v37, 0.0 }
 0x2c2   : > { %v1661_v51 = vadd.f32 -1.0, %v1969_v45  ;;  %v1333_v48 = vsel %vm1317_vm0, 1.0, %v1314_v50  ;;  %v1332_v22 = vsel %vm1317_vm0, 1.0, %v1313_v20 }
 0x2c3   : > { %1747 = vst [vmem:[%s2207_s13 + $0x10] sm:$0xff] %v1719_v47   ;;  %v1405_v46 = vsel %vm1341_vm7, %v2398_v25, %v1662_v49  ;;  %v1380_v63 = vmul.f32 1.442695, %v1333_v48  ;;  %v1378_v57 = vmul.f32 1.442695, %v1332_v22  ;;  %vm1349_vm15 = vcmp.gt.f32.partialorder %v1333_v48, 0.0 }
 0x2c4   : > { %v1971_v52 = vpop.eup %1970  ;;  %v1404_v53 = vsel %vm1340_vm8, %v2404_v26, %v1661_v51  ;;  %vm1348_vm0 = vcmp.gt.f32.partialorder %v1332_v22, 0.0 }
 0x2c5   : > { %v1973_v54 = vpop.eup %1972  ;;  %v1724_v55 = vpack.c.bf16 %v1405_v46, %v1404_v53  ;;  %v1664_v56 = vadd.f32 -1.0, %v1971_v52  ;;  %1982 = vpow2.f32 %v1380_v63 }
 0x2c6   : > { %v1663_v25 = vadd.f32 -1.0, %v1973_v54  ;;  %1984 = vpow2.f32 %v1378_v57 }
 0x2c7   : > { %1748 = vst [vmem:[%s2207_s13 + $0x18] sm:$0xff] %v1724_v55   ;;  %v1407_v58 = vsel %vm1343_vm9, %v2412_v29, %v1664_v56 }
 0x2c8   : > { %v1975_v62 = vpop.eup %1974  ;;  %v1406_v30 = vsel %vm1342_vm10, %v2418_v59, %v1663_v25 }
 0x2c9   : > { %v1729_v26 = vpack.c.bf16 %v1407_v58, %v1406_v30  ;;  %v1666_v60 = vadd.f32 -1.0, %v1975_v62  ;;  %v1977_v61 = vpop.eup %1976 }
 0x2ca   : > { %v1665_v33 = vadd.f32 -1.0, %v1977_v61 }
 0x2cb   : > { %1749 = vst [vmem:[%s2207_s13 + $0x20] sm:$0xff] %v1729_v26   ;;  %v1409_v0 = vsel %vm1345_vm11, %v2428_v4, %v1666_v60 }
 0x2cc   : > { %v1979_v1 = vpop.eup %1978  ;;  %v1408_v29 = vsel %vm1344_vm12, %v2445_v17, %v1665_v33 }
 0x2cd   : > { %v1668_v2 = vadd.f32 -1.0, %v1979_v1  ;;  %v1981_v3 = vpop.eup %1980  ;;  %v1734_v5 = vpack.c.bf16 %v1409_v0, %v1408_v29 }
 0x2ce   : > { %v1667_v6 = vadd.f32 -1.0, %v1981_v3 }
 0x2cf   : > { %v1411_v59 = vsel %vm1347_vm13, %v1331_v32, %v1668_v2  ;;  %1750 = vst [vmem:[%s2207_s13 + $0x28] sm:$0xff] %v1734_v5  }
 0x2d0   : > { %v1410_v8 = vsel %vm1346_vm14, %v1330_v37, %v1667_v6 }
 0x2d1   : > { %v1739_v10 = vpack.c.bf16 %v1411_v59, %v1410_v8 }
 0x2d2   : > { %v1983_v9 = vpop.eup %1982 }
 0x2d3   : > { %v1985_v4 = vpop.eup %1984  ;;  %v1670_v12 = vadd.f32 -1.0, %v1983_v9  ;;  %1751 = vst [vmem:[%s2207_s13 + $0x30] sm:$0xff] %v1739_v10  }
 0x2d4   : > { %v1669_v34 = vadd.f32 -1.0, %v1985_v4 }
 0x2d5   : > { %v1413_v13 = vsel %vm1349_vm15, %v1333_v48, %v1670_v12 }
 0x2d6   : > { %v1412_v15 = vsel %vm1348_vm0, %v1332_v22, %v1669_v34 }
 0x2d7   : > { %v1744_v40 = vpack.c.bf16 %v1413_v13, %v1412_v15 }
 0x2d9   : > { %1752 = vst [vmem:[%s2207_s13 + $0x38] sm:$0xff] %v1744_v40  }
 0x2da PF: > { %s28_s19 = sadd.s32 1, %s2066_s19   ;;  %s2528_s16 = sld [smem:[#allocation8_spill]] }
 0x2db   : > { %p25_p12 = scmp.ge.s32.totalorder %s28_s19, 6   ;;  %s2529_s28 = sld [smem:[#allocation9_spill]] }
 0x2dc   : > { %s2530_s18 = sld [smem:[#allocation10_spill]]  ;;  %s2531_s1 = smov %s2046_s14 }
 0x2dd   : > { %s2532_s14 = smov %s2179_s23  ;;  %s2533_s15 = smov %s2058_s17 }
 0x2de   :  { %27 = sbr.rel (!%p25_p12) target bundleno = 30 (0x1e), region = 141 }
 0x2e1   : > { %s2534_s17 = smov %s2529_s28 }

// kernel: fwd.7
= control target key start
LH: loop header
LB: loop body
LE: loop exit
PB: predicated region body
PF: predicated region fallthrough
CT: control target
= control target key end

     0   :  { %s2180_s0 = inlined_call_operand.vmem [shape: s32[2,2], index: 0, kind: input, shape index: {}]   ;;  %s2181_s2 = inlined_call_operand.vmem [shape: f32[256,1], index: 2, kind: input, shape index: {}]   ;;  %s2182_s3 = inlined_call_operand.vmem [shape: f32[256,1], index: 3, kind: input, shape index: {}]   ;;  %s2183_s4 = inlined_call_operand.vmem [shape: f32[1,256], index: 4, kind: input, shape index: {}]   ;;  %s2184_s5 = inlined_call_operand.vmem [shape: bf16[256,128], index: 5, kind: input, shape index: {}]   ;;  %s2185_s6 = inlined_call_operand.vmem [shape: s8[256,256], index: 6, kind: input, shape index: {}]   ;;  %s2186_s7 = inlined_call_operand.vmem [shape: f32[1,128], index: 7, kind: input, shape index: {}]   ;;  %s2187_s8 = inlined_call_operand.vmem [shape: f32[256,128], index: 8, kind: output, shape index: {}]   ;;  %s2188_s1 = inlined_call_operand.vmem [shape: s32[2], index: 1, kind: input, shape index: {}]  }
   0x1   :  { %2191 = sst [smem:[#allocation10_spill]] %s2185_s6  ;;  %s13_s29 = sshll.u32 %s2180_s0, 4  ;;  %s14_s29 = int_to_ptr.vmem [resolvable:$true] %s13_s29 }
   0x2   :  { %s17_s10 = sshll.u32 %s2188_s1, 4  ;;  %s1715_s11 = scalar_lea.vmem %s14_s29, 32  ;;  %s18_s10 = int_to_ptr.vmem [resolvable:$true] %s17_s10 }
   0x3   :  { %p1716_p0 = scmp.ne.s32.totalorder %s14_s29, %s1715_s11  ;;  %p1720_p1 = scmp.lt.s32.totalorder %s14_s29, %s14_s29 }
   0x4   :  { %p1721_p2 = scmp.lt.s32.totalorder %s1715_s11, %s1715_s11 }
   0x6   :  { %p1722_p3 = por %p1721_p2, %p1720_p1 }
   0x8   :  { %p1723_p4 = pnand %p1722_p3, %p1716_p0 }
   0xa   :  { %1726 = shalt.err (!%p1723_p4)  }
   0xb   :  { %s1797_s12 = smov [#allocation4]   ;;  %s1727_s13 = scalar_lea.vmem %s18_s10, 16 }
   0xc   :  { %16 = dma.vmem_to_smem %s14_s29, 32, %s1797_s12, [#allocation3] }
   0xd   :  { %p1728_p5 = scmp.ne.s32.totalorder %s18_s10, %s1727_s13  ;;  %p1732_p6 = scmp.lt.s32.totalorder %s18_s10, %s18_s10 }
   0xe   :  { %p1733_p7 = scmp.lt.s32.totalorder %s1727_s13, %s1727_s13 }
  0x10   :  { %p1734_p8 = por %p1733_p7, %p1732_p6 }
  0x12   :  { %p1735_p9 = pnand %p1734_p8, %p1728_p5 }
  0x14   :  { %1738 = shalt.err (!%p1735_p9)  }
  0x15   :  { %s1798_s0 = smov [#allocation5]  }
  0x16   :  { %20 = dma.vmem_to_smem %s18_s10, 16, %s1798_s0, [#allocation3] }
  0x17   :  { %1767 = dma.done.wait [#allocation3], 48 }
  0x18   :  { %1768 = vsyncadd [#allocation3], 4294967248 }
  0x19   :  { %22 = sfence }
  0x1a   :  { %s1853_s1 = smov 0   ;;  %s1855_s14 = smov 0  }
  0x1b   :  { %s1857_s15 = smov 0   ;;  %s1859_s16 = smov 0  }
  0x1c   :  { %s1861_s17 = smov 0   ;;  %s1863_s18 = smov 0  }
  0x1d   :  { %s1865_s19 = smov 0  }
  0x1e LB: > { %s37_s20 = sadd.s32 1, %s1787_s17  ;;  %s40_s21 = sadd.s32 1, %s1791_s18  ;;  %s1795_s19 = sphi %s1865_s19, %s28_s19   ;;  %s1791_s18 = sphi %s1863_s18, %s2202_s18   ;;  %s1787_s17 = sphi %s1861_s17, %s2201_s17   ;;  %s1783_s16 = sphi %s1859_s16, %s2200_s16   ;;  %s1779_s15 = sphi %s1857_s15, %s2199_s15   ;;  %s1775_s14 = sphi %s1855_s14, %s2198_s14   ;;  %s1771_s1 = sphi %s1853_s1, %s2197_s1  }
  0x1f   : > { %p38_p10 = scmp.ge.s32.totalorder %s37_s20, 2  ;;  %s180_s22 = sshra.s32 %s1787_s17, 7 }
  0x20   : > { %s182_s23 = sadd.s32 %s1791_s18, %s180_s22  ;;  %s185_s24 = sand.u32 127, %s1787_s17 }
  0x21   : > { %s2204_s20 = smov (%p38_p10, %s37_s20), 0  ;;  %s2206_s21 = smov (!%p38_p10, %s40_s21), %s1791_s18 }
  0x22   : > { %2192 = sst [smem:[#allocation8_spill]] %s2204_s20  ;;  %s1477_s25 = sshll.u32 %s182_s23, 7 }
  0x23   : > { %p42_p11 = scmp.ge.s32.totalorder %s2206_s21, 2  ;;  %s186_s26 = sadd.s32 %s1477_s25, %s185_s24 }
  0x24   : > { %s188_s27 = sshra.s32 %s2204_s20, 7  ;;  %s193_s28 = sand.u32 127, %s2204_s20 }
  0x25   : > { %s2208_s21 = smov (%p42_p11, %s2206_s21), 0  ;;  %p208_p12 = scmp.ne.s32.totalorder %s1775_s14, %s1771_s1 }
  0x26   : > { %2193 = sst [smem:[#allocation9_spill]] %s2208_s21  ;;  %s190_s30 = sadd.s32 %s188_s27, %s2208_s21 }
  0x27   : > { %s187_s29 = sld [smem:[#allocation4 + %s186_s26]]  ;;  %s1478_s9 = sshll.u32 %s190_s30, 7 }
  0x28   : > { %p209_p13 = scmp.eq.s32.totalorder %s1795_s19, 0  ;;  %s194_s10 = sadd.s32 %s1478_s9, %s193_s28 }
  0x29   : > { %s195_s11 = sld [smem:[#allocation4 + %s194_s10]]  ;;  %s196_s12 = ssub.s32 %s1791_s18, %s2208_s21 }
  0x2a   : > { %p210_p0 = por %p209_p13, %p208_p12  ;;  %s201_s22 = sadd.s32 1, %s1775_s14 }
  0x2b   : > { %p1480_p2 = scmp.ge.s32.totalorder %s1795_s19, 4 }
  0x2f   : > { %s197_s13 = ssub.s32 %s187_s29, %s195_s11  ;;  %284 = sbr.rel (%p1480_p2) target bundleno = 64 (0x40), region = 20 }
  0x30   : > { %s198_s0 = sor.u32 %s197_s13, %s196_s12 }
  0x31   : > { %p199_p1 = scmp.eq.s32.totalorder %s198_s0, 0 }
  0x33   : > { %s1908_s23 = scalar_select %p199_p1, %s1775_s14, %s201_s22  }
  0x34   : > { %352 = sbr.rel (!%p210_p0) target bundleno = 64 (0x40), region = 40  ;;  %s364_s24 = sld [smem:[#allocation4 + %s186_s26]] (%p210_p0) }
  0x35   : > { %s354_s25 = sand.u32 (%p210_p0), 1, %s1775_s14   ;;  %s1513_s27 = sshll.u32 (%p210_p0), %s1791_s18, 3 }
  0x36   : > { %s1481_s30 = sshll.u32 (%p210_p0), %s354_s25, 5  ;;  %s2194_s6 = sld [smem:[#allocation10_spill]] (%p210_p0) }
  0x37   : > { %s356_s11 = scalar_lea.vmem (%p210_p0), [#allocation6], %s1481_s30 }
  0x3a   : > { %s367_s28 = sadd.s32 %s1513_s27, %s364_s24 }
  0x3b   : > { %s1485_s9 = sshll.u32 %s367_s28, 3 }
  0x3c   : > { %s369_s29 = scalar_lea.vmem %s2194_s6, %s1485_s9 }
  0x3d   : > { %v404_v0 = vld [vmem:[%s369_s29] sm:$0xff]  ;;  %v406_v1 = vld [vmem:[%s369_s29 + $0x10] sm:$0xff] }
  0x3e   : > { %v408_v2 = vld [vmem:[%s369_s29 + $0x20] sm:$0xff]  ;;  %405 = vst [vmem:[%s356_s11] sm:$0xff] %v404_v0  ;;  %407 = vst [vmem:[%s356_s11 + $0x8] sm:$0xff] %v406_v1  ;;  %v410_v3 = vld [vmem:[%s369_s29 + $0x30] sm:$0xff] }
  0x3f   : > { %409 = vst [vmem:[%s356_s11 + $0x10] sm:$0xff] %v408_v2  ;;  %411 = vst [vmem:[%s356_s11 + $0x18] sm:$0xff] %v410_v3 }
  0x40 PF: > { %p1486_p3 = scmp.ge.s32.totalorder %s1795_s19, 1  ;;  %p416_p4 = scmp.lt.s32.totalorder %s1795_s19, 5 }
  0x42   : > { %p417_p5 = pnand %p1486_p3, %p416_p4 }
  0x43   : > { %s423_s21 = sand.u32 (!%p417_p5), 1, %s1771_s1   ;;  %s1488_s26 = sshll.u32 (!%p417_p5), %s1783_s16, 4 }
  0x44   : > { %420 = sbr.rel (%p417_p5) target bundleno = 705 (0x2c1), region = 78  ;;  %s1487_s12 = sshll.u32 (!%p417_p5), %s423_s21, 5 }
  0x45   : > { %p487_p6 = scmp.lt.s32.totalorder (!%p417_p5), %s1488_s26, 31  ;;  %s498_s13 = sshra.s32 (!%p417_p5), %s1779_s15, 7 }
  0x46   : > { %s500_s0 = sadd.s32 (!%p417_p5), %s1783_s16, %s498_s13  ;;  %s503_s22 = sand.u32 (!%p417_p5), 127, %s1779_s15 }
  0x47   : > { %s1492_s25 = sshll.u32 (!%p417_p5), %s500_s0, 7  ;;  %p1498_p9 = scmp.ne.s32.totalorder (!%p417_p5), %s1779_s15, 0 }
  0x48   : > { %s504_s1 = sadd.s32 (!%p417_p5), %s1492_s25, %s503_s22 }
  0x49   : > { %s2210_s26 = smov (!%p487_p6, %s1488_s26), 31  ;;  %s505_s13 = sld [smem:[#allocation4 + %s504_s1]] }
  0x4a   : > { %s1489_s24 = sshll.u32 %s2210_s26, 3  ;;  %s524_s20 = sld [smem:[#allocation4 + %s504_s1]] }
  0x4b   : > { %s1926_s28 = scalar_lea.vmem %s2181_s2, %s1489_s24  ;;  %s1931_s29 = scalar_lea.vmem %s2182_s3, %s1489_s24 }
  0x4c   : > { %s1936_s6 = scalar_lea.vmem %s2187_s8, %s1489_s24  ;;  %s1949_s24 = scalar_lea.vmem [#allocation6], %s1487_s12 }
  0x4f   : > { %p506_p7 = scmp.lt.s32.totalorder %s505_s13, 1 }
  0x50   : > { %s1494_s26 = sshll.u32 %s524_s20, 4 }
  0x51   : > { %s2212_s13 = smov (!%p506_p7, %s505_s13), 1  ;;  %p526_p8 = scmp.lt.s32.totalorder %s1494_s26, 31 }
  0x52   : > { %s508_s30 = scalar_lea.vmem %s2183_s4, %s2212_s13  ;;  %558 = sbr.rel (%p1498_p9) target bundleno = 96 (0x60), region = 86 }
  0x53   : > { %s2214_s26 = smov (!%p526_p8, %s1494_s26), 31 }
  0x54   : > { %s1495_s9 = sshll.u32 %s2214_s26, 2 }
  0x55   : > { %s1947_s10 = scalar_lea.vmem %s2184_s5, %s1495_s9 }
  0x57   : > { %v1799_v4 = vmov 0.0  }
  0x58   : > { %559 = vst [vmem:[#allocation2 + $0x30] sm:$0xff] %v1799_v4  ;;  %560 = vst [vmem:[#allocation2] sm:$0xff] %v1799_v4 }
  0x59   : > { %561 = vst [vmem:[#allocation2 + $0x58] sm:$0xff] %v1799_v4  ;;  %562 = vst [vmem:[#allocation2 + $0x18] sm:$0xff] %v1799_v4 }
  0x5a   : > { %563 = vst [vmem:[#allocation2 + $0x50] sm:$0xff] %v1799_v4  ;;  %564 = vst [vmem:[#allocation2 + $0x68] sm:$0xff] %v1799_v4 }
  0x5b   : > { %565 = vst [vmem:[#allocation2 + $0x8] sm:$0xff] %v1799_v4  ;;  %566 = vst [vmem:[#allocation2 + $0x48] sm:$0xff] %v1799_v4 }
  0x5c   : > { %567 = vst [vmem:[#allocation2 + $0x40] sm:$0xff] %v1799_v4  ;;  %568 = vst [vmem:[#allocation2 + $0x20] sm:$0xff] %v1799_v4 }
  0x5d   : > { %569 = vst [vmem:[#allocation2 + $0x10] sm:$0xff] %v1799_v4  ;;  %570 = vst [vmem:[#allocation2 + $0x38] sm:$0xff] %v1799_v4 }
  0x5e   : > { %571 = vst [vmem:[#allocation2 + $0x60] sm:$0xff] %v1799_v4  ;;  %572 = vst [vmem:[#allocation2 + $0x70] sm:$0xff] %v1799_v4 }
  0x5f   : > { %573 = vst [vmem:[#allocation2 + $0x78] sm:$0xff] %v1799_v4  ;;  %574 = vst [vmem:[#allocation2 + $0x28] sm:$0xff] %v1799_v4 }
  0x60 PF: > { %s575_s20 = sld [smem:[#allocation5 + %s1783_s16]] }
  0x66   : > { %p1499_p10 = scmp.ge.s32.totalorder %s1779_s15, %s575_s20 }
  0x68   : > { %579 = sbr.rel (%p1499_p10) target bundleno = 522 (0x20a), region = 90 }
  0x6d   : > { %v588_v5 = vld [vmem:[%s1926_s28 + $0x40] sm:$0xff]  ;;  %v1800_v7 = vmov 0   ;;  %v589_v8 = vld [vmem:[%s1926_s28 + $0x48] sm:$0xff]  ;;  %v583_v10 = vld [vmem:[%s1926_s28 + $0x18] sm:$0xff] }
  0x6e   : > { %v580_v6 = vld [vmem:[%s1926_s28] sm:$0xff]  ;;  %1640 = vset.pattern.permute.xlu1 %v1800_v7  ;;  %1639 = vset.pattern.permute.xlu0 %v1800_v7  ;;  %v581_v9 = vld [vmem:[%s1926_s28 + $0x8] sm:$0xff]  ;;  %v582_v11 = vld [vmem:[%s1926_s28 + $0x10] sm:$0xff] }
  0x6f   : > { %639 = vperm.xlu1 %1640, %v588_v5   ;;  %599 = vperm.xlu0 %1639, %v580_v6   ;;  %v591_v12 = vld [vmem:[%s1926_s28 + $0x58] sm:$0xff]  ;;  %v590_v13 = vld [vmem:[%s1926_s28 + $0x50] sm:$0xff]  ;;  %v748_v14 = vld [vmem:[%s1931_s29 + $0x8] sm:$0xff] }
  0x70   : > { %v747_v15 = vld [vmem:[%s1931_s29] sm:$0xff]  ;;  %v1641_v16 = vld [vmem:[%s1947_s10 + $0x38] sm:$0xff]   ;;  %v1642_v17 = vld [vmem:[%s1947_s10 + $0x30] sm:$0xff]  }
  0x71   : > { %1530 = vmatprep.subr.bf16.mxu0 %v1641_v16  ;;  %1562 = vmatprep.subr.bf16.mxu1 %v1641_v16  ;;  %v756_v18 = vld [vmem:[%s1931_s29 + $0x48] sm:$0xff]  ;;  %v755_v19 = vld [vmem:[%s1931_s29 + $0x40] sm:$0xff]  ;;  %v750_v21 = vld [vmem:[%s1931_s29 + $0x18] sm:$0xff] }
  0x72   : > { %1531 = vmatpush3.bf16.msra.mxu0 %v1641_v16  ;;  %1570 = vmatpush3.bf16.msra.mxu1 %v1641_v16  ;;  %v1643_v20 = vld [vmem:[%s1947_s10 + $0x28] sm:$0xff]   ;;  %v749_v22 = vld [vmem:[%s1931_s29 + $0x10] sm:$0xff]  ;;  %v1644_v23 = vld [vmem:[%s1947_s10 + $0x20] sm:$0xff]  }
  0x73   : > { %644 = vperm.xlu1 %1640, %v589_v8   ;;  %604 = vperm.xlu0 %1639, %v581_v9   ;;  %v758_v24 = vld [vmem:[%s1931_s29 + $0x58] sm:$0xff]  ;;  %v757_v25 = vld [vmem:[%s1931_s29 + $0x50] sm:$0xff]  ;;  %v585_v27 = vld [vmem:[%s1926_s28 + $0x28] sm:$0xff] }
  0x74   : > { %1532 = vmatprep.subr.bf16.mxu0 %v1642_v17  ;;  %1563 = vmatprep.subr.bf16.mxu1 %v1642_v17  ;;  %v1645_v26 = vld [vmem:[%s1947_s10 + $0x18] sm:$0xff]   ;;  %v584_v28 = vld [vmem:[%s1926_s28 + $0x20] sm:$0xff]  ;;  %v1646_v29 = vld [vmem:[%s1947_s10 + $0x10] sm:$0xff]  }
  0x75   : > { %v593_v30 = vld [vmem:[%s1926_s28 + $0x68] sm:$0xff]  ;;  %v592_v31 = vld [vmem:[%s1926_s28 + $0x60] sm:$0xff]  ;;  %v587_v33 = vld [vmem:[%s1926_s28 + $0x38] sm:$0xff] }
  0x76   : > { %1533 = vmatpush3.bf16.msra.mxu0 %v1642_v17  ;;  %1571 = vmatpush3.bf16.msra.mxu1 %v1642_v17  ;;  %v1647_v32 = vld [vmem:[%s1947_s10 + $0x8] sm:$0xff]   ;;  %v586_v34 = vld [vmem:[%s1926_s28 + $0x30] sm:$0xff]  ;;  %v1648_v35 = vld [vmem:[%s1947_s10] sm:$0xff]  }
  0x77   : > { %614 = vperm.xlu1 %1640, %v583_v10   ;;  %609 = vperm.xlu0 %1639, %v582_v11   ;;  %v595_v36 = vld [vmem:[%s1926_s28 + $0x78] sm:$0xff]  ;;  %v594_v37 = vld [vmem:[%s1926_s28 + $0x70] sm:$0xff]  ;;  %v752_v38 = vld [vmem:[%s1931_s29 + $0x28] sm:$0xff] }
  0x78   : > { %1534 = vmatprep.subr.bf16.mxu0 %v1643_v20  ;;  %1564 = vmatprep.subr.bf16.mxu1 %v1643_v20  ;;  %v751_v39 = vld [vmem:[%s1931_s29 + $0x20] sm:$0xff]  ;;  %v760_v40 = vld [vmem:[%s1931_s29 + $0x68] sm:$0xff]  ;;  %v754_v42 = vld [vmem:[%s1931_s29 + $0x38] sm:$0xff] }
  0x79   : > { %v759_v41 = vld [vmem:[%s1931_s29 + $0x60] sm:$0xff]  ;;  %v753_v43 = vld [vmem:[%s1931_s29 + $0x30] sm:$0xff]  ;;  %v762_v44 = vld [vmem:[%s1931_s29 + $0x78] sm:$0xff] }
  0x7a   : > { %1535 = vmatpush3.bf16.msra.mxu0 %v1643_v20  ;;  %1572 = vmatpush3.bf16.msra.mxu1 %v1643_v20  ;;  %v761_v45 = vld [vmem:[%s1931_s29 + $0x70] sm:$0xff]  ;;  %v1999_v50 = vld [vmem:[%s508_s30] ss:$0 sm:$0xff] }
  0x7b   : > { %654 = vperm.xlu1 %1640, %v591_v12   ;;  %649 = vperm.xlu0 %1639, %v590_v13  }
  0x7c   : > { %1536 = vmatprep.subr.bf16.mxu0 %v1644_v23  ;;  %1565 = vmatprep.subr.bf16.mxu1 %v1644_v23 }
  0x7e   : > { %1537 = vmatpush3.bf16.msra.mxu0 %v1644_v23  ;;  %1573 = vmatpush3.bf16.msra.mxu1 %v1644_v23 }
  0x7f   : > { %770 = vperm.xlu1 %1640, %v748_v14   ;;  %765 = vperm.xlu0 %1639, %v747_v15  }
  0x80   : > { %1538 = vmatprep.subr.bf16.mxu0 %v1645_v26  ;;  %1566 = vmatprep.subr.bf16.mxu1 %v1645_v26 }
  0x82   : > { %1539 = vmatpush3.bf16.msra.mxu0 %v1645_v26  ;;  %1574 = vmatpush3.bf16.msra.mxu1 %v1645_v26 }
  0x83   : > { %810 = vperm.xlu1 %1640, %v756_v18   ;;  %805 = vperm.xlu0 %1639, %v755_v19  }
  0x84   : > { %1540 = vmatprep.subr.bf16.mxu0 %v1646_v29  ;;  %1567 = vmatprep.subr.bf16.mxu1 %v1646_v29 }
  0x86   : > { %1541 = vmatpush3.bf16.msra.mxu0 %v1646_v29  ;;  %1575 = vmatpush3.bf16.msra.mxu1 %v1646_v29 }
  0x87   : > { %780 = vperm.xlu1 %1640, %v750_v21   ;;  %775 = vperm.xlu0 %1639, %v749_v22  }
  0x88   : > { %1542 = vmatprep.subr.bf16.mxu0 %v1647_v32  ;;  %1568 = vmatprep.subr.bf16.mxu1 %v1647_v32 }
  0x8a   : > { %1543 = vmatpush3.bf16.msra.mxu0 %v1647_v32  ;;  %1576 = vmatpush3.bf16.msra.mxu1 %v1647_v32 }
  0x8b   : > { %820 = vperm.xlu1 %1640, %v758_v24   ;;  %815 = vperm.xlu0 %1639, %v757_v25  }
  0x8c   : > { %1544 = vmatprep.subr.bf16.mxu0 %v1648_v35  ;;  %1569 = vmatprep.subr.bf16.mxu1 %v1648_v35 }
  0x8e   : > { %1545 = vmatpush3.bf16.msra.mxu0 %v1648_v35  ;;  %1577 = vmatpush3.bf16.msra.mxu1 %v1648_v35 }
  0x8f   : > { %624 = vperm.xlu1 %1640, %v585_v27   ;;  %619 = vperm.xlu0 %1639, %v584_v28  }
  0x93   : > { %664 = vperm.xlu1 %1640, %v593_v30   ;;  %659 = vperm.xlu0 %1639, %v592_v31  }
  0x97   : > { %634 = vperm.xlu1 %1640, %v587_v33   ;;  %629 = vperm.xlu0 %1639, %v586_v34  }
  0x9b   : > { %674 = vperm.xlu1 %1640, %v595_v36   ;;  %669 = vperm.xlu0 %1639, %v594_v37  }
  0x9f   : > { %790 = vperm.xlu1 %1640, %v752_v38   ;;  %785 = vperm.xlu0 %1639, %v751_v39  }
  0xa3   : > { %830 = vperm.xlu1 %1640, %v760_v40   ;;  %825 = vperm.xlu0 %1639, %v759_v41  }
  0xa7   : > { %800 = vperm.xlu1 %1640, %v754_v42   ;;  %795 = vperm.xlu0 %1639, %v753_v43  }
  0xab   : > { %840 = vperm.xlu1 %1640, %v762_v44   ;;  %835 = vperm.xlu0 %1639, %v761_v45  }
  0xea   : > { %v640_v46 = vpop.permute.xlu1 %639  ;;  %v600_v47 = vpop.permute.xlu0 %599 }
  0xeb   : > { %v683_v51 = vadd.f32 %v1999_v50, %v600_v47  ;;  %v691_v55 = vadd.f32 %v1999_v50, %v640_v46 }
  0xed   : > { %v715_v56 = vmul.f32 0.2, %v683_v51  ;;  %vm699_vm1 = vcmp.gt.f32.partialorder %v683_v51, 0.0  ;;  %v723_v63 = vmul.f32 0.2, %v691_v55  ;;  %vm707_vm3 = vcmp.gt.f32.partialorder %v691_v55, 0.0 }
  0xee   : > { %v645_v48 = vpop.permute.xlu1 %644  ;;  %v605_v49 = vpop.permute.xlu0 %604 }
  0xef   : > { %v684_v52 = vadd.f32 %v1999_v50, %v605_v49  ;;  %v692_v57 = vadd.f32 %v1999_v50, %v645_v48  ;;  %v731_v3 = vsel %vm699_vm1, %v683_v51, %v715_v56  ;;  %v739_v15 = vsel %vm707_vm3, %v691_v55, %v723_v63  ;;  %v915_v49 = vld [vmem:[%s1949_s24] sm:$0xff]  ;;  %v917_v56 = vld [vmem:[%s1949_s24 + $0x10] sm:$0xff] }
  0xf1   : > { %v716_v58 = vmul.f32 0.2, %v684_v52  ;;  %vm700_vm0 = vcmp.gt.f32.partialorder %v684_v52, 0.0  ;;  %v724_v0 = vmul.f32 0.2, %v692_v57  ;;  %vm708_vm2 = vcmp.gt.f32.partialorder %v692_v57, 0.0 }
  0xf2   : > { %v615_v53 = vpop.permute.xlu1 %614  ;;  %v610_v54 = vpop.permute.xlu0 %609 }
  0xf3   : > { %v686_v61 = vadd.f32 %v1999_v50, %v615_v53  ;;  %v685_v62 = vadd.f32 %v1999_v50, %v610_v54  ;;  %v732_v2 = vsel %vm700_vm0, %v684_v52, %v716_v58  ;;  %v740_v13 = vsel %vm708_vm2, %v692_v57, %v724_v0 }
  0xf4   : > { %v919_v54 = vunpack.c.l.s8.bf16 %v915_v49  ;;  %v923_v0 = vunpack.c.l.s8.bf16 %v917_v56 }
  0xf5   : > { %v718_v7 = vmul.f32 0.2, %v686_v61  ;;  %v717_v8 = vmul.f32 0.2, %v685_v62  ;;  %vm702_vm4 = vcmp.gt.f32.partialorder %v686_v61, 0.0  ;;  %vm701_vm5 = vcmp.gt.f32.partialorder %v685_v62, 0.0 }
  0xf6   : > { %v655_v59 = vpop.permute.xlu1 %654  ;;  %v650_v60 = vpop.permute.xlu0 %649 }
  0xf7   : > { %v694_v9 = vadd.f32 %v1999_v50, %v655_v59  ;;  %v693_v12 = vadd.f32 %v1999_v50, %v650_v60  ;;  %v734_v21 = vsel %vm702_vm4, %v686_v61, %v718_v7  ;;  %v733_v22 = vsel %vm701_vm5, %v685_v62, %v717_v8 }
  0xf9   : > { %v726_v23 = vmul.f32 0.2, %v694_v9  ;;  %v725_v26 = vmul.f32 0.2, %v693_v12  ;;  %vm710_vm6 = vcmp.gt.f32.partialorder %v694_v9, 0.0  ;;  %vm709_vm7 = vcmp.gt.f32.partialorder %v693_v12, 0.0 }
  0xfa   : > { %v771_v1 = vpop.permute.xlu1 %770  ;;  %v766_v4 = vpop.permute.xlu0 %765 }
  0xfb   : > { %v844_v5 = vsub.f32 %v732_v2, %v771_v1  ;;  %v843_v6 = vsub.f32 %v731_v3, %v766_v4  ;;  %v742_v35 = vsel %vm710_vm6, %v694_v9, %v726_v23  ;;  %v741_v37 = vsel %vm709_vm7, %v693_v12, %v725_v26 }
  0xfd   : > { %v860_v10 = vmin.f32 %v844_v5, 0.0  ;;  %v859_v11 = vmin.f32 %v843_v6, 0.0  ;;  %v920_v5 = vunpack.c.h.s8.bf16 %v915_v49 }
  0xfe   : > { %v811_v14 = vpop.permute.xlu1 %810  ;;  %v806_v16 = vpop.permute.xlu0 %805 }
  0xff   : > { %v877_v17 = vmul.f32 1.442695, %v860_v10  ;;  %v875_v18 = vmul.f32 1.442695, %v859_v11  ;;  %v852_v19 = vsub.f32 %v740_v13, %v811_v14  ;;  %v851_v20 = vsub.f32 %v739_v15, %v806_v16 }
 0x100   : > { %v924_v16 = vunpack.c.h.s8.bf16 %v917_v56 }
 0x101   : > { %1649 = vpow2.f32 %v877_v17  ;;  %v868_v24 = vmin.f32 %v852_v19, 0.0  ;;  %v867_v25 = vmin.f32 %v851_v20, 0.0 }
 0x102   : > { %1651 = vpow2.f32 %v875_v18  ;;  %v781_v27 = vpop.permute.xlu1 %780  ;;  %v776_v28 = vpop.permute.xlu0 %775 }
 0x103   : > { %v893_v29 = vmul.f32 1.442695, %v868_v24  ;;  %v891_v30 = vmul.f32 1.442695, %v867_v25  ;;  %v846_v31 = vsub.f32 %v734_v21, %v781_v27  ;;  %v845_v32 = vsub.f32 %v733_v22, %v776_v28 }
 0x105   : > { %1653 = vpow2.f32 %v893_v29  ;;  %v862_v33 = vmin.f32 %v846_v31, 0.0  ;;  %v861_v34 = vmin.f32 %v845_v32, 0.0 }
 0x106   : > { %1655 = vpow2.f32 %v891_v30  ;;  %v821_v36 = vpop.permute.xlu1 %820  ;;  %v816_v38 = vpop.permute.xlu0 %815 }
 0x107   : > { %v881_v39 = vmul.f32 1.442695, %v862_v33  ;;  %v879_v40 = vmul.f32 1.442695, %v861_v34  ;;  %v854_v41 = vsub.f32 %v742_v35, %v821_v36  ;;  %v853_v42 = vsub.f32 %v741_v37, %v816_v38 }
 0x109   : > { %1657 = vpow2.f32 %v881_v39  ;;  %v870_v43 = vmin.f32 %v854_v41, 0.0  ;;  %v869_v44 = vmin.f32 %v853_v42, 0.0 }
 0x10a   : > { %1659 = vpow2.f32 %v879_v40  ;;  %v625_v45 = vpop.permute.xlu1 %624  ;;  %v620_v46 = vpop.permute.xlu0 %619 }
 0x10b   : > { %v897_v47 = vmul.f32 1.442695, %v870_v43  ;;  %v895_v48 = vmul.f32 1.442695, %v869_v44  ;;  %v688_v58 = vadd.f32 %v1999_v50, %v625_v45  ;;  %v687_v59 = vadd.f32 %v1999_v50, %v620_v46 }
 0x10d   : > { %1661 = vpow2.f32 %v897_v47  ;;  %v720_v3 = vmul.f32 0.2, %v688_v58  ;;  %v719_v4 = vmul.f32 0.2, %v687_v59  ;;  %vm704_vm8 = vcmp.gt.f32.partialorder %v688_v58, 0.0 }
 0x10e   : > { %v1650_v51 = vpop.eup %1649  ;;  %1663 = vpow2.f32 %v895_v48  ;;  %v665_v52 = vpop.permute.xlu1 %664  ;;  %vm703_vm9 = vcmp.gt.f32.partialorder %v687_v59, 0.0 }
 0x10f   : > { %v660_v53 = vpop.permute.xlu0 %659  ;;  %v1652_v55 = vpop.eup %1651  ;;  %v696_v7 = vadd.f32 %v1999_v50, %v665_v52  ;;  %v736_v17 = vsel %vm704_vm8, %v688_v58, %v720_v3  ;;  %v735_v22 = vsel %vm703_vm9, %v687_v59, %v719_v4 }
 0x110   : > { %v907_v57 = vpack.c.bf16 %v1650_v51, %v1652_v55  ;;  %v695_v8 = vadd.f32 %v1999_v50, %v660_v53 }
 0x111   : > { %v728_v19 = vmul.f32 0.2, %v696_v7  ;;  %vm712_vm10 = vcmp.gt.f32.partialorder %v696_v7, 0.0 }
 0x112   : > { %v1654_v60 = vpop.eup %1653  ;;  %v635_v61 = vpop.permute.xlu1 %634  ;;  %v927_v63 = vmul.bf16 %v919_v54, %v907_v57  ;;  %v727_v20 = vmul.f32 0.2, %v695_v8  ;;  %vm711_vm11 = vcmp.gt.f32.partialorder %v695_v8, 0.0 }
 0x113   : > { %v630_v62 = vpop.permute.xlu0 %629  ;;  %v1656_v1 = vpop.eup %1655  ;;  %v690_v13 = vadd.f32 %v1999_v50, %v635_v61  ;;  %v744_v35 = vsel %vm712_vm10, %v696_v7, %v728_v19 }
 0x114   : > { %1546 = vmatprep.mubr.bf16.mxu0 %v927_v63  ;;  %v911_v2 = vpack.c.bf16 %v1654_v60, %v1656_v1  ;;  %v689_v14 = vadd.f32 %v1999_v50, %v630_v62  ;;  %v743_v37 = vsel %vm711_vm11, %v695_v8, %v727_v20 }
 0x115   : > { %v722_v28 = vmul.f32 0.2, %v690_v13  ;;  %vm706_vm12 = vcmp.gt.f32.partialorder %v690_v13, 0.0 }
 0x116   : > { %v1658_v6 = vpop.eup %1657  ;;  %v675_v9 = vpop.permute.xlu1 %674  ;;  %v931_v11 = vmul.bf16 %v923_v0, %v911_v2  ;;  %v721_v29 = vmul.f32 0.2, %v689_v14  ;;  %vm705_vm13 = vcmp.gt.f32.partialorder %v689_v14, 0.0 }
 0x117   : > { %v670_v10 = vpop.permute.xlu0 %669  ;;  %v1660_v12 = vpop.eup %1659  ;;  %v698_v31 = vadd.f32 %v1999_v50, %v675_v9  ;;  %v738_v44 = vsel %vm706_vm12, %v690_v13, %v722_v28  ;;  %v937_v28 = vld [vmem:[#allocation2 + $0x58] sm:$0xff] }
 0x118   : > { %1554 = vmatprep.mubr.bf16.mxu1 %v931_v11  ;;  %v908_v15 = vpack.c.bf16 %v1658_v6, %v1660_v12  ;;  %v697_v34 = vadd.f32 %v1999_v50, %v670_v10  ;;  %v737_v45 = vsel %vm705_vm13, %v689_v14, %v721_v29  ;;  %v916_v6 = vld [vmem:[%s1949_s24 + $0x8] sm:$0xff]  ;;  %v918_v10 = vld [vmem:[%s1949_s24 + $0x18] sm:$0xff] }
 0x119   : > { %v730_v46 = vmul.f32 0.2, %v698_v31  ;;  %vm714_vm14 = vcmp.gt.f32.partialorder %v698_v31, 0.0  ;;  %v921_v8 = vunpack.c.l.s8.bf16 %v916_v6  ;;  %v925_v14 = vunpack.c.l.s8.bf16 %v918_v10 }
 0x11a   : > { %v1662_v18 = vpop.eup %1661  ;;  %v791_v21 = vpop.permute.xlu1 %790  ;;  %v928_v24 = vmul.bf16 %v920_v5, %v908_v15  ;;  %v729_v49 = vmul.f32 0.2, %v697_v34  ;;  %vm713_vm15 = vcmp.gt.f32.partialorder %v697_v34, 0.0  ;;  %v922_v19 = vunpack.c.h.s8.bf16 %v916_v6 }
 0x11b   : > { %v786_v23 = vpop.permute.xlu0 %785  ;;  %v1664_v25 = vpop.eup %1663  ;;  %v848_v26 = vsub.f32 %v736_v17, %v791_v21  ;;  %v746_v58 = vsel %vm714_vm14, %v698_v31, %v730_v46 }
 0x11c   : > { %v847_v27 = vsub.f32 %v735_v22, %v786_v23  ;;  %1547 = vmatmul.mubr.bf16.vlgmr.msra.gmra.mxu0 %v928_v24  ;;  %v912_v30 = vpack.c.bf16 %v1662_v18, %v1664_v25  ;;  %v745_v60 = vsel %vm713_vm15, %v697_v34, %v729_v49  ;;  %v926_v24 = vunpack.c.h.s8.bf16 %v918_v10  ;;  %v945_v34 = vld [vmem:[#allocation2 + $0x10] sm:$0xff] }
 0x11d   : > { %v864_v32 = vmin.f32 %v848_v26, 0.0 }
 0x11e   : > { %v863_v33 = vmin.f32 %v847_v27, 0.0  ;;  %v831_v36 = vpop.permute.xlu1 %830  ;;  %v932_v39 = vmul.bf16 %v924_v16, %v912_v30  ;;  %v935_v30 = vld [vmem:[#allocation2 + $0x30] sm:$0xff] }
 0x11f   : > { %v826_v38 = vpop.permute.xlu0 %825  ;;  %v885_v40 = vmul.f32 1.442695, %v864_v32  ;;  %v856_v42 = vsub.f32 %v744_v35, %v831_v36 }
 0x120   : > { %v883_v41 = vmul.f32 1.442695, %v863_v33  ;;  %v855_v43 = vsub.f32 %v743_v37, %v826_v38  ;;  %1555 = vmatmul.mubr.bf16.vlgmr.msra.gmra.mxu1 %v932_v39  ;;  %v938_v33 = vld [vmem:[#allocation2 + $0x18] sm:$0xff]  ;;  %v936_v38 = vld [vmem:[#allocation2] sm:$0xff] }
 0x121   : > { %1665 = vpow2.f32 %v885_v40  ;;  %v872_v47 = vmin.f32 %v856_v42, 0.0  ;;  %v943_v39 = vld [vmem:[#allocation2 + $0x40] sm:$0xff] }
 0x122   : > { %v871_v48 = vmin.f32 %v855_v43, 0.0  ;;  %1667 = vpow2.f32 %v883_v41  ;;  %v801_v50 = vpop.permute.xlu1 %800 }
 0x123   : > { %v796_v51 = vpop.permute.xlu0 %795  ;;  %v901_v52 = vmul.f32 1.442695, %v872_v47  ;;  %v850_v54 = vsub.f32 %v738_v44, %v801_v50  ;;  %v946_v44 = vld [vmem:[#allocation2 + $0x38] sm:$0xff] }
 0x124   : > { %v899_v53 = vmul.f32 1.442695, %v871_v48  ;;  %v849_v55 = vsub.f32 %v737_v45, %v796_v51  ;;  %v944_v48 = vld [vmem:[#allocation2 + $0x20] sm:$0xff] }
 0x125   : > { %1669 = vpow2.f32 %v901_v52  ;;  %v866_v56 = vmin.f32 %v850_v54, 0.0  ;;  %v941_v52 = vld [vmem:[#allocation2 + $0x8] sm:$0xff]  ;;  %v939_v54 = vld [vmem:[#allocation2 + $0x50] sm:$0xff] }
 0x126   : > { %v865_v57 = vmin.f32 %v849_v55, 0.0  ;;  %1671 = vpow2.f32 %v899_v53  ;;  %v841_v59 = vpop.permute.xlu1 %840 }
 0x127   : > { %v836_v61 = vpop.permute.xlu0 %835  ;;  %v889_v62 = vmul.f32 1.442695, %v866_v56  ;;  %v858_v0 = vsub.f32 %v746_v58, %v841_v59  ;;  %v949_v58 = vld [vmem:[#allocation2 + $0x78] sm:$0xff] }
 0x128   : > { %v887_v63 = vmul.f32 1.442695, %v865_v57  ;;  %v857_v1 = vsub.f32 %v745_v60, %v836_v61  ;;  %v942_v57 = vld [vmem:[#allocation2 + $0x48] sm:$0xff] }
 0x129   : > { %1673 = vpow2.f32 %v889_v62  ;;  %v874_v2 = vmin.f32 %v858_v0, 0.0  ;;  %v940_v62 = vld [vmem:[#allocation2 + $0x68] sm:$0xff] }
 0x12a   : > { %v873_v3 = vmin.f32 %v857_v1, 0.0  ;;  %1675 = vpow2.f32 %v887_v63  ;;  %v947_v63 = vld [vmem:[#allocation2 + $0x60] sm:$0xff] }
 0x12b   : > { %v905_v4 = vmul.f32 1.442695, %v874_v2 }
 0x12c   : > { %v903_v5 = vmul.f32 1.442695, %v873_v3 }
 0x12d   : > { %1677 = vpow2.f32 %v905_v4  ;;  %v950_v4 = vld [vmem:[#allocation2 + $0x28] sm:$0xff] }
 0x12e   : > { %v1666_v7 = vpop.eup %1665  ;;  %1679 = vpow2.f32 %v903_v5 }
 0x12f   : > { %v1668_v9 = vpop.eup %1667 }
 0x130   : > { %v909_v11 = vpack.c.bf16 %v1666_v7, %v1668_v9 }
 0x132   : > { %v1670_v12 = vpop.eup %1669  ;;  %v929_v13 = vmul.bf16 %v921_v8, %v909_v11  ;;  %v948_v8 = vld [vmem:[#allocation2 + $0x70] sm:$0xff] }
 0x133   : > { %v1672_v15 = vpop.eup %1671 }
 0x134   : > { %1550 = vmatprep.mubr.bf16.mxu0 %v929_v13  ;;  %v913_v16 = vpack.c.bf16 %v1670_v12, %v1672_v15 }
 0x136   : > { %v1674_v17 = vpop.eup %1673  ;;  %v933_v18 = vmul.bf16 %v925_v14, %v913_v16 }
 0x137   : > { %v1676_v20 = vpop.eup %1675 }
 0x138   : > { %1558 = vmatprep.mubr.bf16.mxu1 %v933_v18  ;;  %v910_v21 = vpack.c.bf16 %v1674_v17, %v1676_v20 }
 0x13a   : > { %v1678_v22 = vpop.eup %1677  ;;  %v930_v23 = vmul.bf16 %v922_v19, %v910_v21 }
 0x13b   : > { %v1680_v25 = vpop.eup %1679 }
 0x13c   : > { %1551 = vmatmul.mubr.bf16.gmra.mxu0 %v930_v23  ;;  %v914_v26 = vpack.c.bf16 %v1678_v22, %v1680_v25 }
 0x13e   : > { %v934_v27 = vmul.bf16 %v926_v24, %v914_v26 }
 0x140   : > { %1559 = vmatmul.mubr.bf16.gmra.mxu1 %v934_v27 }
 0x1dc   : > { %v1548_v29 = vpop.f32.mrf.mxu0 }
 0x1dd   : > { %v1114_v31 = vadd.f32 %v1548_v29, %v937_v28 }
 0x1de   : > { %v1049_v32 = vpop.f32.mrf.mxu0 }
 0x1df   : > { %1130 = vst [vmem:[#allocation2 + $0x58] sm:$0xff] %v1114_v31  ;;  %v1112_v35 = vadd.f32 %v1049_v32, %v935_v30 }
 0x1e0   : > { %v1549_v36 = vpop.f32.mrf.mxu0  ;;  %v1556_v37 = vpop.f32.mrf.mxu1 }
 0x1e1   : > { %1128 = vst [vmem:[#allocation2 + $0x30] sm:$0xff] %v1112_v35  ;;  %v1115_v40 = vadd.f32 %v1549_v36, %v938_v33  ;;  %v1122_v41 = vadd.f32 %v1556_v37, %v945_v34 }
 0x1e2   : > { %v1052_v42 = vpop.f32.mrf.mxu0  ;;  %v1081_v43 = vpop.f32.mrf.mxu1 }
 0x1e3   : > { %1131 = vst [vmem:[#allocation2 + $0x18] sm:$0xff] %v1115_v40  ;;  %1138 = vst [vmem:[#allocation2 + $0x10] sm:$0xff] %v1122_v41  ;;  %v1113_v45 = vadd.f32 %v1052_v42, %v936_v38  ;;  %v1120_v46 = vadd.f32 %v1081_v43, %v943_v39 }
 0x1e4   : > { %v1557_v47 = vpop.f32.mrf.mxu1 }
 0x1e5   : > { %1129 = vst [vmem:[#allocation2] sm:$0xff] %v1113_v45  ;;  %1136 = vst [vmem:[#allocation2 + $0x40] sm:$0xff] %v1120_v46  ;;  %v1123_v49 = vadd.f32 %v1557_v47, %v946_v44 }
 0x1e6   : > { %v1084_v50 = vpop.f32.mrf.mxu1 }
 0x1e7   : > { %1139 = vst [vmem:[#allocation2 + $0x38] sm:$0xff] %v1123_v49  ;;  %v1121_v51 = vadd.f32 %v1084_v50, %v944_v48 }
 0x1e9   : > { %1137 = vst [vmem:[#allocation2 + $0x20] sm:$0xff] %v1121_v51 }
 0x1fc   : > { %v1552_v53 = vpop.f32.mrf.mxu0 }
 0x1fd   : > { %v1118_v55 = vadd.f32 %v1552_v53, %v941_v52 }
 0x1fe   : > { %v1065_v56 = vpop.f32.mrf.mxu0 }
 0x1ff   : > { %1134 = vst [vmem:[#allocation2 + $0x8] sm:$0xff] %v1118_v55  ;;  %v1116_v59 = vadd.f32 %v1065_v56, %v939_v54 }
 0x200   : > { %v1553_v60 = vpop.f32.mrf.mxu0  ;;  %v1560_v61 = vpop.f32.mrf.mxu1 }
 0x201   : > { %1132 = vst [vmem:[#allocation2 + $0x50] sm:$0xff] %v1116_v59  ;;  %v1119_v0 = vadd.f32 %v1553_v60, %v942_v57  ;;  %v1126_v1 = vadd.f32 %v1560_v61, %v949_v58 }
 0x202   : > { %v1068_v2 = vpop.f32.mrf.mxu0  ;;  %v1097_v3 = vpop.f32.mrf.mxu1 }
 0x203   : > { %1135 = vst [vmem:[#allocation2 + $0x48] sm:$0xff] %v1119_v0  ;;  %1142 = vst [vmem:[#allocation2 + $0x78] sm:$0xff] %v1126_v1  ;;  %v1117_v5 = vadd.f32 %v1068_v2, %v940_v62  ;;  %v1124_v6 = vadd.f32 %v1097_v3, %v947_v63 }
 0x204   : > { %v1561_v7 = vpop.f32.mrf.mxu1 }
 0x205   : > { %1133 = vst [vmem:[#allocation2 + $0x68] sm:$0xff] %v1117_v5  ;;  %1140 = vst [vmem:[#allocation2 + $0x60] sm:$0xff] %v1124_v6  ;;  %v1127_v9 = vadd.f32 %v1561_v7, %v950_v4 }
 0x206   : > { %v1100_v10 = vpop.f32.mrf.mxu1 }
 0x207   : > { %1143 = vst [vmem:[#allocation2 + $0x28] sm:$0xff] %v1127_v9  ;;  %v1125_v11 = vadd.f32 %v1100_v10, %v948_v8 }
 0x209   : > { %1141 = vst [vmem:[#allocation2 + $0x70] sm:$0xff] %v1125_v11 }
 0x20a PF: > { %p1509_p11 = scmp.ne.s32.totalorder %s1779_s15, 1 }
 0x20c   : > { %1147 = sbr.rel (%p1509_p11) target bundleno = 705 (0x2c1), region = 94 }
 0x211   : > { %v2023_v12 = vld [vmem:[#allocation2 + $0x58] sm:$0xff]  ;;  %v2025_v13 = vld [vmem:[#allocation2 + $0x30] sm:$0xff]  ;;  %v1801_v15 = vmov 4   ;;  %v2032_v19 = vld [vmem:[#allocation2] sm:$0xff]  ;;  %v1315_v61 = vlaneseq }
 0x212   : > { %v2027_v14 = vld [vmem:[#allocation2 + $0x18] sm:$0xff]  ;;  %1682 = vset.pattern.permute.xlu1 %v1801_v15  ;;  %1681 = vset.pattern.permute.xlu0 %v1801_v15  ;;  %v1166_v16 = vmax.f32 %v2023_v12, 1e-20  ;;  %v1164_v17 = vmax.f32 %v2025_v13, 1e-20  ;;  %v2034_v20 = vld [vmem:[#allocation2 + $0x68] sm:$0xff] }
 0x213   : > { %v1167_v18 = vmax.f32 %v2027_v14, 1e-20  ;;  %v1165_v21 = vmax.f32 %v2032_v19, 1e-20  ;;  %v2037_v22 = vld [vmem:[#allocation2 + $0x50] sm:$0xff]  ;;  %v2041_v25 = vld [vmem:[#allocation2 + $0x48] sm:$0xff] }
 0x214   : > { %1683 = vrcp.f32 %v1166_v16  ;;  %v1169_v23 = vmax.f32 %v2034_v20, 1e-20  ;;  %v1168_v24 = vmax.f32 %v2037_v22, 1e-20  ;;  %v2043_v26 = vld [vmem:[#allocation2 + $0x8] sm:$0xff]  ;;  %v2047_v29 = vld [vmem:[#allocation2 + $0x20] sm:$0xff] }
 0x215   : > { %1685 = vrcp.f32 %v1164_v17  ;;  %v1171_v27 = vmax.f32 %v2041_v25, 1e-20  ;;  %v1170_v28 = vmax.f32 %v2043_v26, 1e-20  ;;  %v2049_v30 = vld [vmem:[#allocation2 + $0x40] sm:$0xff]  ;;  %v2053_v33 = vld [vmem:[#allocation2 + $0x38] sm:$0xff] }
 0x216   : > { %1687 = vrcp.f32 %v1167_v18  ;;  %v1173_v31 = vmax.f32 %v2047_v29, 1e-20  ;;  %v1172_v32 = vmax.f32 %v2049_v30, 1e-20  ;;  %v2055_v34 = vld [vmem:[#allocation2 + $0x10] sm:$0xff]  ;;  %v2061_v42 = vld [vmem:[#allocation2 + $0x60] sm:$0xff] }
 0x217   : > { %1689 = vrcp.f32 %v1165_v21  ;;  %v1175_v37 = vmax.f32 %v2053_v33, 1e-20  ;;  %v1174_v39 = vmax.f32 %v2055_v34, 1e-20  ;;  %v2059_v40 = vld [vmem:[#allocation2 + $0x70] sm:$0xff]  ;;  %v2065_v46 = vld [vmem:[#allocation2 + $0x28] sm:$0xff] }
 0x218   : > { %1691 = vrcp.f32 %v1169_v23  ;;  %v1177_v43 = vmax.f32 %v2059_v40, 1e-20  ;;  %v1176_v45 = vmax.f32 %v2061_v42, 1e-20  ;;  %v2067_v48 = vld [vmem:[#allocation2 + $0x78] sm:$0xff]  ;;  %v2071_v62 = vand.u32 127, %v1315_v61 }
 0x219   : > { %1693 = vrcp.f32 %v1168_v24  ;;  %v1179_v49 = vmax.f32 %v2065_v46, 1e-20  ;;  %v1178_v51 = vmax.f32 %v2067_v48, 1e-20  ;;  %v2076_v63 = vld [vmem:[%s2186_s7] ss:$0 sm:$0xff] }
 0x21a   : > { %1695 = vrcp.f32 %v1171_v27  ;;  %vm1317_vm0 = vcmp.eq.s32.totalorder %v2071_v62, 4 }
 0x21b   : > { %1697 = vrcp.f32 %v1170_v28 }
 0x21c   : > { %1699 = vrcp.f32 %v1173_v31 }
 0x21d   : > { %1701 = vrcp.f32 %v1172_v32 }
 0x21e   : > { %1703 = vrcp.f32 %v1175_v37 }
 0x21f   : > { %1705 = vrcp.f32 %v1174_v39 }
 0x220   : > { %1707 = vrcp.f32 %v1177_v43 }
 0x221   : > { %v1684_v35 = vpop.eup %1683  ;;  %1709 = vrcp.f32 %v1176_v45 }
 0x222   : > { %v1686_v36 = vpop.eup %1685  ;;  %1208 = vperm.xlu1 %1682, %v1684_v35   ;;  %1711 = vrcp.f32 %v1179_v49 }
 0x223   : > { %v1688_v38 = vpop.eup %1687  ;;  %1198 = vperm.xlu0 %1681, %v1686_v36   ;;  %1713 = vrcp.f32 %v1178_v51 }
 0x224   : > { %v1690_v41 = vpop.eup %1689 }
 0x225   : > { %v1692_v44 = vpop.eup %1691 }
 0x226   : > { %1213 = vperm.xlu1 %1682, %v1688_v38   ;;  %v1694_v47 = vpop.eup %1693 }
 0x227   : > { %1203 = vperm.xlu0 %1681, %v1690_v41   ;;  %v1696_v50 = vpop.eup %1695 }
 0x228   : > { %v1698_v52 = vpop.eup %1697 }
 0x229   : > { %v1700_v53 = vpop.eup %1699 }
 0x22a   : > { %1223 = vperm.xlu1 %1682, %v1692_v44   ;;  %v1702_v54 = vpop.eup %1701 }
 0x22b   : > { %1218 = vperm.xlu0 %1681, %v1694_v47   ;;  %v1704_v55 = vpop.eup %1703 }
 0x22c   : > { %v1706_v56 = vpop.eup %1705 }
 0x22d   : > { %v1708_v57 = vpop.eup %1707 }
 0x22e   : > { %1233 = vperm.xlu1 %1682, %v1696_v50   ;;  %v1710_v58 = vpop.eup %1709 }
 0x22f   : > { %1228 = vperm.xlu0 %1681, %v1698_v52   ;;  %v1712_v59 = vpop.eup %1711 }
 0x230   : > { %v1714_v60 = vpop.eup %1713 }
 0x232   : > { %1243 = vperm.xlu1 %1682, %v1700_v53  }
 0x233   : > { %1238 = vperm.xlu0 %1681, %v1702_v54  }
 0x236   : > { %1253 = vperm.xlu1 %1682, %v1704_v55  }
 0x237   : > { %1248 = vperm.xlu0 %1681, %v1706_v56  }
 0x23a   : > { %1263 = vperm.xlu1 %1682, %v1708_v57  }
 0x23b   : > { %1258 = vperm.xlu0 %1681, %v1710_v58  }
 0x23e   : > { %1273 = vperm.xlu1 %1682, %v1712_v59  }
 0x23f   : > { %1268 = vperm.xlu0 %1681, %v1714_v60  }
 0x29d   : > { %v1209_v0 = vpop.permute.xlu1 %1208 }
 0x29e   : > { %v1278_v1 = vmul.f32 %v1209_v0, %v2023_v12  ;;  %v1199_v2 = vpop.permute.xlu0 %1198 }
 0x29f   : > { %v1276_v3 = vmul.f32 %v1199_v2, %v2025_v13 }
 0x2a0   : > { %v1301_v4 = vadd.f32 %v2076_v63, %v1278_v1 }
 0x2a1   : > { %v1299_v5 = vadd.f32 %v2076_v63, %v1276_v3  ;;  %v1214_v6 = vpop.permute.xlu1 %1213 }
 0x2a2   : > { %v1320_v7 = vsel %vm1317_vm0, 1.0, %v1301_v4  ;;  %v1279_v8 = vmul.f32 %v1214_v6, %v2027_v14  ;;  %v1204_v9 = vpop.permute.xlu0 %1203 }
 0x2a3   : > { %1336 = vst [vmem:[%s1936_s6 + $0x10] sm:$0xff] %v1320_v7  ;;  %v1318_v10 = vsel %vm1317_vm0, 1.0, %v1299_v5  ;;  %v1277_v11 = vmul.f32 %v1204_v9, %v2032_v19 }
 0x2a4   : > { %1334 = vst [vmem:[%s1936_s6] sm:$0xff] %v1318_v10  ;;  %v1302_v12 = vadd.f32 %v2076_v63, %v1279_v8 }
 0x2a5   : > { %v1300_v13 = vadd.f32 %v2076_v63, %v1277_v11  ;;  %v1224_v15 = vpop.permute.xlu1 %1223 }
 0x2a6   : > { %v1321_v16 = vsel %vm1317_vm0, 1.0, %v1302_v12  ;;  %v1281_v14 = vmul.f32 %v1224_v15, %v2034_v20  ;;  %v1219_v17 = vpop.permute.xlu0 %1218 }
 0x2a7   : > { %1337 = vst [vmem:[%s1936_s6 + $0x18] sm:$0xff] %v1321_v16  ;;  %v1319_v18 = vsel %vm1317_vm0, 1.0, %v1300_v13  ;;  %v1280_v19 = vmul.f32 %v1219_v17, %v2037_v22 }
 0x2a8   : > { %1335 = vst [vmem:[%s1936_s6 + $0x8] sm:$0xff] %v1319_v18  ;;  %v1304_v21 = vadd.f32 %v2076_v63, %v1281_v14 }
 0x2a9   : > { %v1303_v23 = vadd.f32 %v2076_v63, %v1280_v19  ;;  %v1234_v24 = vpop.permute.xlu1 %1233 }
 0x2aa   : > { %v1323_v27 = vsel %vm1317_vm0, 1.0, %v1304_v21  ;;  %v1283_v20 = vmul.f32 %v1234_v24, %v2041_v25  ;;  %v1229_v28 = vpop.permute.xlu0 %1228 }
 0x2ab   : > { %1339 = vst [vmem:[%s1936_s6 + $0x28] sm:$0xff] %v1323_v27  ;;  %v1322_v31 = vsel %vm1317_vm0, 1.0, %v1303_v23  ;;  %v1282_v22 = vmul.f32 %v1229_v28, %v2043_v26 }
 0x2ac   : > { %1338 = vst [vmem:[%s1936_s6 + $0x20] sm:$0xff] %v1322_v31  ;;  %v1306_v32 = vadd.f32 %v2076_v63, %v1283_v20 }
 0x2ad   : > { %v1305_v35 = vadd.f32 %v2076_v63, %v1282_v22  ;;  %v1244_v36 = vpop.permute.xlu1 %1243 }
 0x2ae   : > { %v1325_v37 = vsel %vm1317_vm0, 1.0, %v1306_v32  ;;  %v1285_v25 = vmul.f32 %v1244_v36, %v2047_v29  ;;  %v1239_v38 = vpop.permute.xlu0 %1238 }
 0x2af   : > { %1341 = vst [vmem:[%s1936_s6 + $0x38] sm:$0xff] %v1325_v37  ;;  %v1324_v39 = vsel %vm1317_vm0, 1.0, %v1305_v35  ;;  %v1284_v26 = vmul.f32 %v1239_v38, %v2049_v30 }
 0x2b0   : > { %1340 = vst [vmem:[%s1936_s6 + $0x30] sm:$0xff] %v1324_v39  ;;  %v1308_v41 = vadd.f32 %v2076_v63, %v1285_v25 }
 0x2b1   : > { %v1307_v43 = vadd.f32 %v2076_v63, %v1284_v26  ;;  %v1254_v44 = vpop.permute.xlu1 %1253 }
 0x2b2   : > { %v1327_v45 = vsel %vm1317_vm0, 1.0, %v1308_v41  ;;  %v1287_v29 = vmul.f32 %v1254_v44, %v2053_v33  ;;  %v1249_v47 = vpop.permute.xlu0 %1248 }
 0x2b3   : > { %1343 = vst [vmem:[%s1936_s6 + $0x48] sm:$0xff] %v1327_v45  ;;  %v1326_v49 = vsel %vm1317_vm0, 1.0, %v1307_v43  ;;  %v1286_v30 = vmul.f32 %v1249_v47, %v2055_v34 }
 0x2b4   : > { %1342 = vst [vmem:[%s1936_s6 + $0x40] sm:$0xff] %v1326_v49  ;;  %v1310_v50 = vadd.f32 %v2076_v63, %v1287_v29 }
 0x2b5   : > { %v1309_v51 = vadd.f32 %v2076_v63, %v1286_v30  ;;  %v1264_v52 = vpop.permute.xlu1 %1263 }
 0x2b6   : > { %v1329_v53 = vsel %vm1317_vm0, 1.0, %v1310_v50  ;;  %v1289_v33 = vmul.f32 %v1264_v52, %v2059_v40  ;;  %v1259_v54 = vpop.permute.xlu0 %1258 }
 0x2b7   : > { %1345 = vst [vmem:[%s1936_s6 + $0x58] sm:$0xff] %v1329_v53  ;;  %v1328_v55 = vsel %vm1317_vm0, 1.0, %v1309_v51  ;;  %v1288_v34 = vmul.f32 %v1259_v54, %v2061_v42 }
 0x2b8   : > { %1344 = vst [vmem:[%s1936_s6 + $0x50] sm:$0xff] %v1328_v55  ;;  %v1312_v56 = vadd.f32 %v2076_v63, %v1289_v33 }
 0x2b9   : > { %v1311_v57 = vadd.f32 %v2076_v63, %v1288_v34  ;;  %v1274_v58 = vpop.permute.xlu1 %1273 }
 0x2ba   : > { %v1331_v59 = vsel %vm1317_vm0, 1.0, %v1312_v56  ;;  %v1291_v40 = vmul.f32 %v1274_v58, %v2065_v46  ;;  %v1269_v60 = vpop.permute.xlu0 %1268 }
 0x2bb   : > { %1347 = vst [vmem:[%s1936_s6 + $0x68] sm:$0xff] %v1331_v59  ;;  %v1330_v61 = vsel %vm1317_vm0, 1.0, %v1311_v57  ;;  %v1290_v0 = vmul.f32 %v1269_v60, %v2067_v48 }
 0x2bc   : > { %1346 = vst [vmem:[%s1936_s6 + $0x60] sm:$0xff] %v1330_v61  ;;  %v1314_v42 = vadd.f32 %v2076_v63, %v1291_v40 }
 0x2bd   : > { %v1313_v1 = vadd.f32 %v2076_v63, %v1290_v0 }
 0x2be   : > { %v1333_v2 = vsel %vm1317_vm0, 1.0, %v1314_v42 }
 0x2bf   : > { %1349 = vst [vmem:[%s1936_s6 + $0x78] sm:$0xff] %v1333_v2  ;;  %v1332_v3 = vsel %vm1317_vm0, 1.0, %v1313_v1 }
 0x2c0   : > { %1348 = vst [vmem:[%s1936_s6 + $0x70] sm:$0xff] %v1332_v3 }
 0x2c1 PF: > { %s28_s19 = sadd.s32 1, %s1795_s19   ;;  %s2195_s29 = sld [smem:[#allocation8_spill]] }
 0x2c2   : > { %p25_p12 = scmp.ge.s32.totalorder %s28_s19, 6   ;;  %s2196_s11 = sld [smem:[#allocation9_spill]] }
 0x2c3   : > { %s2197_s1 = smov %s1775_s14  ;;  %s2198_s14 = smov %s1908_s23 }
 0x2c4   : > { %s2199_s15 = smov %s1787_s17  ;;  %s2200_s16 = smov %s1791_s18 }
 0x2c5   :  { %27 = sbr.rel (!%p25_p12) target bundleno = 30 (0x1e), region = 141 }
 0x2c7   : > { %s2201_s17 = smov %s2195_s29 }
 0x2c8   : > { %s2202_s18 = smov %s2196_s11 }

</bundles_post_ra>
